<compile_context>
chip_gen: v6e
topology: v6e:2x2x1
jax: 0.10.0
libtpu: 0.0.40
codegen_flags: <defaults>
</compile_context>

<pallas_src>
import math
import jax
import jax.numpy as jnp
from jax.experimental import pallas as pl
from jax.experimental.pallas import tpu as pltpu

BN_EPS = 1e-5


def _bn_tanh_fused(h, gamma, beta):
    """Train-mode BatchNorm1d (batch stats, biased var) fused to one FMA, then tanh."""
    mean = jnp.mean(h, axis=0, keepdims=True)
    var = jnp.mean((h - mean) ** 2, axis=0, keepdims=True)
    scale = gamma * jax.lax.rsqrt(var + BN_EPS)   # rsqrt -> EUP (free slot)
    shift = beta - mean * scale
    return jnp.tanh(h * scale + shift)            # one mul + one add per element


def textnn_kernel(x_ref, w1_ref, g1_ref, be1_ref, w2_ref, g2_ref, be2_ref, o_ref):
    # Linear1 (bias dropped: dead under train-mode BN) + BN1 + Tanh, all in f32.
    x_bf = x_ref[...].astype(jnp.bfloat16)
    h = jnp.dot(x_bf, w1_ref[...], preferred_element_type=jnp.float32)
    h = _bn_tanh_fused(h, g1_ref[...], be1_ref[...])
    # Linear2 + BN2 + Tanh; h stays in VMEM, only the MXU operand is bf16.
    z = jnp.dot(h.astype(jnp.bfloat16), w2_ref[...], preferred_element_type=jnp.float32)
    o_ref[...] = _bn_tanh_fused(z, g2_ref[...], be2_ref[...]).astype(o_ref.dtype)


def prepare_params(params):
    """One-time (outside the hot path) conversion of weights to bf16; drops dead biases."""
    w1, _b1, g1, be1, w2, _b2, g2, be2 = params
    return (w1.astype(jnp.bfloat16), g1, be1, w2.astype(jnp.bfloat16), g2, be2)


def textnn_forward(x, kernel_params):
    """Fused forward.  Everything is VMEM-resident; no grid, no pipelining needed."""
    w1_bf, g1, be1, w2_bf, g2, be2 = kernel_params
    B = x.shape[0]
    D_out = w2_bf.shape[1]

    vmem = pl.BlockSpec(memory_space=pltpu.MemorySpace.VMEM)
    return pl.pallas_call(
        textnn_kernel,
        out_shape=jax.ShapeDtypeStruct((B, D_out), jnp.float32),
        in_specs=[vmem] * 7,
        out_specs=vmem,
    )(x, w1_bf, g1, be1, w2_bf, g2, be2)


def init_params(key, input_dim, hidden_dim, output_dim):
    """PyTorch-style init; Linear weights pre-transposed to (in, out)."""
    k1, k2, k3, k4 = jax.random.split(key, 4)
    bound1 = 1.0 / math.sqrt(input_dim)
    bound2 = 1.0 / math.sqrt(hidden_dim)
    w1 = jax.random.uniform(k1, (input_dim, hidden_dim), jnp.float32, -bound1, bound1)
    b1 = jax.random.uniform(k2, (1, hidden_dim), jnp.float32, -bound1, bound1)
    w2 = jax.random.uniform(k3, (hidden_dim, output_dim), jnp.float32, -bound2, bound2)
    b2 = jax.random.uniform(k4, (1, output_dim), jnp.float32, -bound2, bound2)
    # BatchNorm1d affine params: gamma=1, beta=0 (PyTorch default).
    g1 = jnp.ones((1, hidden_dim), jnp.float32)
    be1 = jnp.zeros((1, hidden_dim), jnp.float32)
    g2 = jnp.ones((1, output_dim), jnp.float32)
    be2 = jnp.zeros((1, output_dim), jnp.float32)
    return (w1, b1, g1, be1, w2, b2, g2, be2)


def textnn_reference(x, params):
    """Full-precision reference including the (mathematically dead) biases."""
    w1, b1, g1, be1, w2, b2, g2, be2 = params

    def bn(h, g, be):
        mean = jnp.mean(h, axis=0, keepdims=True)
        var = jnp.mean((h - mean) ** 2, axis=0, keepdims=True)
        return (h - mean) * jax.lax.rsqrt(var + BN_EPS) * g + be

    h = jnp.tanh(bn(x @ w1 + b1, g1, be1))
    return jnp.tanh(bn(h @ w2 + b2, g2, be2))


if __name__ == "__main__":
    # Small, lane-dense shapes consistent with the module (hidden fixed at 2048
    # by the module; input/output dims shrunk to 128 for a quick run).
    B, D_IN, HIDDEN, D_OUT = 8, 128, 2048, 128

    key = jax.random.PRNGKey(0)
    kx, kp = jax.random.split(key)
    x = jax.random.normal(kx, (B, D_IN), jnp.float32)
    params = init_params(kp, D_IN, HIDDEN, D_OUT)

    # One-time weight preparation (bf16 weights live in HBM; no per-call casts).
    kernel_params = jax.tree_util.tree_map(jax.block_until_ready, prepare_params(params))

    fwd = jax.jit(textnn_forward)
    out = fwd(x, kernel_params)
    out = jax.block_until_ready(out)

    ref = textnn_reference(x, params)
    assert out.shape == (B, D_OUT)
    # bf16 matmul operands (f32 accumulation, f32 BN stats) vs f32 reference.
    assert jnp.allclose(out, ref, atol=3e-2, rtol=3e-2), "mismatch vs JAX reference"

    print("KERNEL_OK")
</pallas_src>

<mosaic_0001>
module attributes {stable_mosaic.version = 11 : i64} {
  func.func @textnn_kernel(%arg0: memref<8x128xf32, #tpu.memory_space<vmem>>, %arg1: memref<128x2048xbf16, #tpu.memory_space<vmem>>, %arg2: memref<1x2048xf32, #tpu.memory_space<vmem>>, %arg3: memref<1x2048xf32, #tpu.memory_space<vmem>>, %arg4: memref<2048x128xbf16, #tpu.memory_space<vmem>>, %arg5: memref<1x128xf32, #tpu.memory_space<vmem>>, %arg6: memref<1x128xf32, #tpu.memory_space<vmem>>, %arg7: memref<8x128xf32, #tpu.memory_space<vmem>>) attributes {dimension_semantics = [], scalar_prefetch = 0 : i64, scratch_operands = 0 : i64, tpu.core_type = #tpu.core_type<tc>} {
    %c0 = arith.constant 0 : index
    %c0_0 = arith.constant 0 : index
    %0 = vector.load %arg0[%c0, %c0_0] : memref<8x128xf32, #tpu.memory_space<vmem>>, vector<8x128xf32>
    %1 = arith.truncf %0 : vector<8x128xf32> to vector<8x128xbf16>
    %c0_1 = arith.constant 0 : index
    %c0_2 = arith.constant 0 : index
    %2 = vector.load %arg1[%c0_1, %c0_2] : memref<128x2048xbf16, #tpu.memory_space<vmem>>, vector<128x2048xbf16>
    %cst = arith.constant dense<0.000000e+00> : vector<8x2048xf32>
    %3 = tpu.matmul %1, %2, %cst {dimension_numbers = #tpu.dot_dimension_numbers<[1], [0], [0], [1], [0, 0, 1, 1], [], []>} : vector<8x128xbf16>, vector<128x2048xbf16>, vector<8x2048xf32> -> vector<8x2048xf32>
    %c0_3 = arith.constant 0 : index
    %c0_4 = arith.constant 0 : index
    %4 = vector.load %arg2[%c0_3, %c0_4] : memref<1x2048xf32, #tpu.memory_space<vmem>>, vector<1x2048xf32>
    %c0_5 = arith.constant 0 : index
    %c0_6 = arith.constant 0 : index
    %5 = vector.load %arg3[%c0_5, %c0_6] : memref<1x2048xf32, #tpu.memory_space<vmem>>, vector<1x2048xf32>
    %cst_7 = arith.constant dense<0.000000e+00> : vector<2048xf32>
    %6 = vector.multi_reduction <add>, %3, %cst_7 [0] : vector<8x2048xf32> to vector<2048xf32>
    %7 = vector.shape_cast %6 : vector<2048xf32> to vector<1x2048xf32>
    %cst_8 = arith.constant 8.000000e+00 : f32
    %8 = vector.broadcast %cst_8 : f32 to vector<1x2048xf32>
    %9 = arith.divf %7, %8 : vector<1x2048xf32>
    %10 = vector.broadcast %9 : vector<1x2048xf32> to vector<8x2048xf32>
    %11 = arith.subf %3, %10 : vector<8x2048xf32>
    %12 = arith.mulf %11, %11 : vector<8x2048xf32>
    %cst_9 = arith.constant dense<0.000000e+00> : vector<2048xf32>
    %13 = vector.multi_reduction <add>, %12, %cst_9 [0] : vector<8x2048xf32> to vector<2048xf32>
    %14 = vector.shape_cast %13 : vector<2048xf32> to vector<1x2048xf32>
    %cst_10 = arith.constant 8.000000e+00 : f32
    %15 = vector.broadcast %cst_10 : f32 to vector<1x2048xf32>
    %16 = arith.divf %14, %15 : vector<1x2048xf32>
    %cst_11 = arith.constant 9.99999974E-6 : f32
    %17 = vector.broadcast %cst_11 : f32 to vector<1x2048xf32>
    %18 = arith.addf %16, %17 : vector<1x2048xf32>
    %19 = math.rsqrt %18 : vector<1x2048xf32>
    %20 = arith.mulf %4, %19 : vector<1x2048xf32>
    %21 = arith.mulf %9, %20 : vector<1x2048xf32>
    %22 = arith.subf %5, %21 : vector<1x2048xf32>
    %23 = vector.broadcast %20 : vector<1x2048xf32> to vector<8x2048xf32>
    %24 = arith.mulf %3, %23 : vector<8x2048xf32>
    %25 = vector.broadcast %22 : vector<1x2048xf32> to vector<8x2048xf32>
    %26 = arith.addf %24, %25 : vector<8x2048xf32>
    %27 = math.tanh %26 : vector<8x2048xf32>
    %28 = arith.truncf %27 : vector<8x2048xf32> to vector<8x2048xbf16>
    %c0_12 = arith.constant 0 : index
    %c0_13 = arith.constant 0 : index
    %29 = vector.load %arg4[%c0_12, %c0_13] : memref<2048x128xbf16, #tpu.memory_space<vmem>>, vector<2048x128xbf16>
    %cst_14 = arith.constant dense<0.000000e+00> : vector<8x128xf32>
    %30 = tpu.matmul %28, %29, %cst_14 {dimension_numbers = #tpu.dot_dimension_numbers<[1], [0], [0], [1], [0, 0, 1, 1], [], []>} : vector<8x2048xbf16>, vector<2048x128xbf16>, vector<8x128xf32> -> vector<8x128xf32>
    %c0_15 = arith.constant 0 : index
    %c0_16 = arith.constant 0 : index
    %31 = vector.load %arg5[%c0_15, %c0_16] : memref<1x128xf32, #tpu.memory_space<vmem>>, vector<1x128xf32>
    %c0_17 = arith.constant 0 : index
    %c0_18 = arith.constant 0 : index
    %32 = vector.load %arg6[%c0_17, %c0_18] : memref<1x128xf32, #tpu.memory_space<vmem>>, vector<1x128xf32>
    %cst_19 = arith.constant dense<0.000000e+00> : vector<128xf32>
    %33 = vector.multi_reduction <add>, %30, %cst_19 [0] : vector<8x128xf32> to vector<128xf32>
    %34 = vector.shape_cast %33 : vector<128xf32> to vector<1x128xf32>
    %cst_20 = arith.constant 8.000000e+00 : f32
    %35 = vector.broadcast %cst_20 : f32 to vector<1x128xf32>
    %36 = arith.divf %34, %35 : vector<1x128xf32>
    %37 = vector.broadcast %36 : vector<1x128xf32> to vector<8x128xf32>
    %38 = arith.subf %30, %37 : vector<8x128xf32>
    %39 = arith.mulf %38, %38 : vector<8x128xf32>
    %cst_21 = arith.constant dense<0.000000e+00> : vector<128xf32>
    %40 = vector.multi_reduction <add>, %39, %cst_21 [0] : vector<8x128xf32> to vector<128xf32>
    %41 = vector.shape_cast %40 : vector<128xf32> to vector<1x128xf32>
    %cst_22 = arith.constant 8.000000e+00 : f32
    %42 = vector.broadcast %cst_22 : f32 to vector<1x128xf32>
    %43 = arith.divf %41, %42 : vector<1x128xf32>
    %cst_23 = arith.constant 9.99999974E-6 : f32
    %44 = vector.broadcast %cst_23 : f32 to vector<1x128xf32>
    %45 = arith.addf %43, %44 : vector<1x128xf32>
    %46 = math.rsqrt %45 : vector<1x128xf32>
    %47 = arith.mulf %31, %46 : vector<1x128xf32>
    %48 = arith.mulf %36, %47 : vector<1x128xf32>
    %49 = arith.subf %32, %48 : vector<1x128xf32>
    %50 = vector.broadcast %47 : vector<1x128xf32> to vector<8x128xf32>
    %51 = arith.mulf %30, %50 : vector<8x128xf32>
    %52 = vector.broadcast %49 : vector<1x128xf32> to vector<8x128xf32>
    %53 = arith.addf %51, %52 : vector<8x128xf32>
    %54 = math.tanh %53 : vector<8x128xf32>
    %c0_24 = arith.constant 0 : index
    %c0_25 = arith.constant 0 : index
    %55 = vector.load %arg7[%c0_24, %c0_25] : memref<8x128xf32, #tpu.memory_space<vmem>>, vector<8x128xf32>
    tpu.vector_store %arg7[%c0_24, %c0_25], %54 {strides = array<i32>} : memref<8x128xf32, #tpu.memory_space<vmem>>, vector<8x128xf32>,
    return
  }
}

</mosaic_0001>

<bundles_post_ra>
// kernel: textnn_forward.1
= control target key start
LH: loop header
LB: loop body
LE: loop exit
PB: predicated region body
PF: predicated region fallthrough
CT: control target
= control target key end

     0   :  { %12 = vsyncpa [#allocation3], 0  ;;  %s4547_s0 = inlined_call_operand.hbm [shape: f32[8,128], index: 0, kind: input, shape index: {}]   ;;  %s4548_s1 = inlined_call_operand.hbm [shape: bf16[128,2048], index: 1, kind: input, shape index: {}]   ;;  %s4549_s2 = inlined_call_operand.hbm [shape: f32[1,2048], index: 2, kind: input, shape index: {}]   ;;  %s4550_s3 = inlined_call_operand.hbm [shape: f32[1,2048], index: 3, kind: input, shape index: {}]   ;;  %s4551_s4 = inlined_call_operand.hbm [shape: bf16[2048,128], index: 4, kind: input, shape index: {}]   ;;  %s4552_s5 = inlined_call_operand.vmem [shape: f32[1,128], index: 5, kind: input, shape index: {}]   ;;  %s4553_s6 = inlined_call_operand.vmem [shape: f32[1,128], index: 6, kind: input, shape index: {}]   ;;  %s4554_s7 = inlined_call_operand.hbm [shape: f32[8,128], index: 7, kind: output, shape index: {}]  }
   0x1   :  { %13 = vsyncpa [#allocation6], 0 }
   0x2   :  { %14 = vsyncpa [#allocation9], 0 }
   0x3   :  { %15 = vsyncpa [#allocation4], 0  ;;  %s4128_s24 = smov [#allocation5]  }
   0x4   :  { %s31_s25 = sshll.u32 %s4128_s24, 4  ;;  %s32_s25 = int_to_ptr.vmem [resolvable:$true] %s31_s25 }
   0x5   :  { %s4008_s26 = scalar_lea.vmem %s32_s25, 16384  ;;  %p4013_p1 = scmp.lt.s32.totalorder %s32_s25, %s32_s25 }
   0x6   :  { %p4009_p0 = scmp.ne.s32.totalorder %s32_s25, %s4008_s26  ;;  %p4014_p2 = scmp.lt.s32.totalorder %s4008_s26, %s4008_s26 }
   0x8   :  { %p4015_p3 = por %p4014_p2, %p4013_p1 }
   0xa   :  { %p4016_p4 = pnand %p4015_p3, %p4009_p0 }
   0xc   :  { %4019 = shalt.err (!%p4016_p4)
}
   0xd   :  { %s4129_s27 = smov 1024   ;;  %s4130_s28 = smov 64  }
   0xe   :  { %37 = dma.hbm_to_vmem [thread:$0]  %s4548_s1, 16384, %s32_s25, [#allocation6], %s4129_s27, %s4129_s27, %s4130_s28  }
   0xf   :  { %s4131_s8 = smov [#allocation8]   ;;  %s4132_s10 = smov [#allocation2]  }
  0x10   :  { %s54_s9 = sshll.u32 %s4131_s8, 4  ;;  %s22_s11 = sshll.u32 %s4132_s10, 4  ;;  %s55_s9 = int_to_ptr.vmem [resolvable:$true] %s54_s9  ;;  %s23_s11 = int_to_ptr.vmem [resolvable:$true] %s22_s11 }
  0x11   :  { %s4028_s12 = scalar_lea.vmem %s55_s9, 256  ;;  %p4033_p6 = scmp.lt.s32.totalorder %s55_s9, %s55_s9 }
  0x12   :  { %p4029_p5 = scmp.ne.s32.totalorder %s55_s9, %s4028_s12  ;;  %p4034_p7 = scmp.lt.s32.totalorder %s4028_s12, %s4028_s12 }
  0x14   :  { %p4035_p8 = por %p4034_p7, %p4033_p6 }
  0x16   :  { %p4036_p9 = pnand %p4035_p8, %p4029_p5 }
  0x18   :  { %4039 = shalt.err (!%p4036_p9)
}
  0x19   :  { %57 = dma.hbm_to_vmem [thread:$0]  %s4550_s3, 256, %s55_s9, [#allocation9]  }
  0x1a   :  { %s4048_s15 = scalar_lea.vmem %s23_s11, 128  ;;  %p4053_p11 = scmp.lt.s32.totalorder %s23_s11, %s23_s11 }
  0x1b   :  { %p4049_p10 = scmp.ne.s32.totalorder %s23_s11, %s4048_s15  ;;  %p4054_p12 = scmp.lt.s32.totalorder %s4048_s15, %s4048_s15 }
  0x1d   :  { %p4055_p13 = por %p4054_p12, %p4053_p11 }
  0x1f   :  { %p4056_p0 = pnand %p4055_p13, %p4049_p10 }
  0x21   :  { %4059 = shalt.err (!%p4056_p0)
}
  0x22   :  { %25 = dma.hbm_to_vmem [thread:$0]  %s4547_s0, 128, %s23_s11, [#allocation3]  }
  0x23   :  { %s4133_s17 = smov [#allocation7]   ;;  %s4134_s19 = smov [#allocation10]  }
  0x24   :  { %s44_s18 = sshll.u32 %s4133_s17, 4  ;;  %s63_s20 = sshll.u32 %s4134_s19, 4  ;;  %s45_s18 = int_to_ptr.vmem [resolvable:$true] %s44_s18  ;;  %s64_s20 = int_to_ptr.vmem [resolvable:$true] %s63_s20 }
  0x25   :  { %s4068_s21 = scalar_lea.vmem %s45_s18, 256  ;;  %p4073_p2 = scmp.lt.s32.totalorder %s45_s18, %s45_s18 }
  0x26   :  { %p4069_p1 = scmp.ne.s32.totalorder %s45_s18, %s4068_s21  ;;  %p4074_p3 = scmp.lt.s32.totalorder %s4068_s21, %s4068_s21 }
  0x28   :  { %p4075_p4 = por %p4074_p3, %p4073_p2 }
  0x2a   :  { %p4076_p5 = pnand %p4075_p4, %p4069_p1 }
  0x2c   :  { %4079 = shalt.err (!%p4076_p5)
}
  0x2d   :  { %47 = dma.hbm_to_vmem [thread:$0]  %s4549_s2, 256, %s45_s18, [#allocation6]  }
  0x2e   :  { %s4088_s23 = scalar_lea.vmem %s64_s20, 16384  ;;  %p4093_p7 = scmp.lt.s32.totalorder %s64_s20, %s64_s20 }
  0x2f   :  { %p4089_p6 = scmp.ne.s32.totalorder %s64_s20, %s4088_s23  ;;  %p4094_p8 = scmp.lt.s32.totalorder %s4088_s23, %s4088_s23 }
  0x31   :  { %p4095_p9 = por %p4094_p8, %p4093_p7 }
  0x33   :  { %p4096_p10 = pnand %p4095_p9, %p4089_p6 }
  0x35   :  { %4099 = shalt.err (!%p4096_p10)
}
  0x36   :  { %s4135_s0 = smov 4  }
  0x37   :  { %69 = dma.hbm_to_vmem [thread:$0]  %s4551_s4, 16384, %s64_s20, [#allocation9], %s4130_s28, %s4130_s28, %s4135_s0  }
  0x38   :  { %4120 = dma.done.wait [#allocation3], 128  }
  0x39   :  { %4121 = vsyncadd [#allocation3], 4294967168 }
  0x3a   :  { %4122 = dma.done.wait [#allocation6], 16640  }
  0x3b   :  { %4123 = vsyncadd [#allocation6], 4294950656 }
  0x3c   :  { %4124 = dma.done.wait [#allocation9], 16640  }
  0x3d   :  { %4125 = vsyncadd [#allocation9], 4294950656  ;;  %v4136_v0 = vmov 0   ;;  %v204_v1 = vld [vmem:[#allocation5 + $0x380] sm:$0xff]  ;;  %v205_v3 = vld [vmem:[#allocation5 + $0x388] sm:$0xff]  ;;  %s4138_s28 = smov [#allocation11]  }
  0x3e   :  { %892 = vmatprep.mubr.bf16.mxu0 %v4136_v0  ;;  %933 = vmatprep.mubr.bf16.mxu1 %v4136_v0  ;;  %v212_v2 = vld [vmem:[#allocation5 + $0x3c0] sm:$0xff]  ;;  %v213_v5 = vld [vmem:[#allocation5 + $0x3c8] sm:$0xff]  ;;  %v206_v63 = vld [vmem:[#allocation5 + $0x390] sm:$0xff]  ;;  %s3350_s29 = sshll.u32 %s4138_s28, 4  ;;  %s3351_s29 = int_to_ptr.vmem [resolvable:$true] %s3350_s29 }
  0x3f   :  { %v3474_v4 = vcombine.high %v204_v1, %v212_v2  ;;  %v3473_v6 = vcombine.low %v204_v1, %v212_v2  ;;  %v188_v7 = vld [vmem:[#allocation5 + $0x300] sm:$0xff]  ;;  %v3476_v9 = vcombine.high %v205_v3, %v213_v5  ;;  %v3475_v10 = vcombine.low %v205_v3, %v213_v5  ;;  %v189_v12 = vld [vmem:[#allocation5 + $0x308] sm:$0xff]  ;;  %v214_v1 = vld [vmem:[#allocation5 + $0x3d0] sm:$0xff]  ;;  %p4105_p12 = scmp.lt.s32.totalorder %s3351_s29, %s3351_s29 }
  0x40   :  { %v196_v8 = vld [vmem:[#allocation5 + $0x340] sm:$0xff]  ;;  %v197_v13 = vld [vmem:[#allocation5 + $0x348] sm:$0xff]  ;;  %v207_v2 = vld [vmem:[#allocation5 + $0x398] sm:$0xff] }
  0x41   :  { %v3458_v11 = vcombine.high %v188_v7, %v196_v8  ;;  %v172_v14 = vld [vmem:[#allocation5 + $0x280] sm:$0xff]  ;;  %860 = vmatprep.subr.bf16.mxu0 %v3474_v4  ;;  %v3460_v15 = vcombine.high %v189_v12, %v197_v13  ;;  %v173_v17 = vld [vmem:[#allocation5 + $0x288] sm:$0xff]  ;;  %901 = vmatprep.subr.bf16.mxu1 %v3476_v9  ;;  %v3457_v19 = vcombine.low %v188_v7, %v196_v8  ;;  %v215_v3 = vld [vmem:[#allocation5 + $0x3d8] sm:$0xff] }
  0x42   :  { %v180_v16 = vld [vmem:[#allocation5 + $0x2c0] sm:$0xff]  ;;  %v181_v18 = vld [vmem:[#allocation5 + $0x2c8] sm:$0xff]  ;;  %861 = vmatpush1.bf16.msra.mxu0 %v3473_v6  ;;  %902 = vmatpush1.bf16.msra.mxu1 %v3475_v10  ;;  %v3459_v20 = vcombine.low %v189_v12, %v197_v13  ;;  %v90_v5 = vld [vmem:[#allocation2] sm:$0xff]  ;;  %v3478_v7 = vcombine.high %v206_v63, %v214_v1  ;;  %v3480_v8 = vcombine.high %v207_v2, %v215_v3 }
  0x43   :  { %862 = vmatprep.subr.bf16.mxu0 %v3458_v11  ;;  %v3442_v21 = vcombine.high %v172_v14, %v180_v16  ;;  %903 = vmatprep.subr.bf16.mxu1 %v3460_v15  ;;  %v3444_v22 = vcombine.high %v173_v17, %v181_v18  ;;  %v156_v23 = vld [vmem:[#allocation5 + $0x200] sm:$0xff]  ;;  %v157_v25 = vld [vmem:[#allocation5 + $0x208] sm:$0xff]  ;;  %v3441_v27 = vcombine.low %v172_v14, %v180_v16  ;;  %v190_v9 = vld [vmem:[#allocation5 + $0x310] sm:$0xff] }
  0x44   :  { %v164_v24 = vld [vmem:[#allocation5 + $0x240] sm:$0xff]  ;;  %v165_v26 = vld [vmem:[#allocation5 + $0x248] sm:$0xff]  ;;  %v3443_v28 = vcombine.low %v173_v17, %v181_v18  ;;  %v198_v10 = vld [vmem:[#allocation5 + $0x350] sm:$0xff]  ;;  %v4199_v11 = vpack.c.bf16 %v90_v5, %v90_v5  ;;  %v3477_v14 = vcombine.low %v206_v63, %v214_v1  ;;  %v3479_v15 = vcombine.low %v207_v2, %v215_v3 }
  0x45   :  { %v3426_v29 = vcombine.high %v156_v23, %v164_v24  ;;  %v3428_v30 = vcombine.high %v157_v25, %v165_v26  ;;  %v140_v31 = vld [vmem:[#allocation5 + $0x180] sm:$0xff]  ;;  %v141_v33 = vld [vmem:[#allocation5 + $0x188] sm:$0xff]  ;;  %v3425_v35 = vcombine.low %v156_v23, %v164_v24  ;;  %v3427_v36 = vcombine.low %v157_v25, %v165_v26  ;;  %v191_v12 = vld [vmem:[#allocation5 + $0x318] sm:$0xff] }
  0x46   :  { %863 = vmatpush1.bf16.msra.mxu0 %v3457_v19  ;;  %904 = vmatpush1.bf16.msra.mxu1 %v3459_v20  ;;  %v148_v32 = vld [vmem:[#allocation5 + $0x1c0] sm:$0xff]  ;;  %v149_v34 = vld [vmem:[#allocation5 + $0x1c8] sm:$0xff]  ;;  %v199_v13 = vld [vmem:[#allocation5 + $0x358] sm:$0xff]  ;;  %v3462_v16 = vcombine.high %v190_v9, %v198_v10 }
  0x47   :  { %864 = vmatprep.subr.bf16.mxu0 %v3442_v21  ;;  %905 = vmatprep.subr.bf16.mxu1 %v3444_v22  ;;  %v3410_v37 = vcombine.high %v140_v31, %v148_v32  ;;  %v3412_v38 = vcombine.high %v141_v33, %v149_v34  ;;  %v124_v39 = vld [vmem:[#allocation5 + $0x100] sm:$0xff]  ;;  %v125_v41 = vld [vmem:[#allocation5 + $0x108] sm:$0xff]  ;;  %v3409_v43 = vcombine.low %v140_v31, %v148_v32  ;;  %v174_v18 = vld [vmem:[#allocation5 + $0x290] sm:$0xff] }
  0x48   :  { %v132_v40 = vld [vmem:[#allocation5 + $0x140] sm:$0xff]  ;;  %v133_v42 = vld [vmem:[#allocation5 + $0x148] sm:$0xff]  ;;  %v3411_v44 = vcombine.low %v141_v33, %v149_v34  ;;  %v3464_v17 = vcombine.high %v191_v12, %v199_v13  ;;  %v182_v19 = vld [vmem:[#allocation5 + $0x2d0] sm:$0xff]  ;;  %v3461_v22 = vcombine.low %v190_v9, %v198_v10  ;;  %v3463_v23 = vcombine.low %v191_v12, %v199_v13 }
  0x49   :  { %v3394_v45 = vcombine.high %v124_v39, %v132_v40  ;;  %v3396_v46 = vcombine.high %v125_v41, %v133_v42  ;;  %v108_v47 = vld [vmem:[#allocation5 + $0x80] sm:$0xff]  ;;  %v109_v49 = vld [vmem:[#allocation5 + $0x88] sm:$0xff]  ;;  %v3393_v51 = vcombine.low %v124_v39, %v132_v40  ;;  %v3395_v52 = vcombine.low %v125_v41, %v133_v42  ;;  %v175_v20 = vld [vmem:[#allocation5 + $0x298] sm:$0xff] }
  0x4a   :  { %865 = vmatpush1.bf16.msra.mxu0 %v3441_v27  ;;  %906 = vmatpush1.bf16.msra.mxu1 %v3443_v28  ;;  %v116_v48 = vld [vmem:[#allocation5 + $0xc0] sm:$0xff]  ;;  %v117_v50 = vld [vmem:[#allocation5 + $0xc8] sm:$0xff]  ;;  %v183_v21 = vld [vmem:[#allocation5 + $0x2d8] sm:$0xff]  ;;  %v3446_v24 = vcombine.high %v174_v18, %v182_v19 }
  0x4b   :  { %866 = vmatprep.subr.bf16.mxu0 %v3426_v29  ;;  %907 = vmatprep.subr.bf16.mxu1 %v3428_v30  ;;  %v3378_v53 = vcombine.high %v108_v47, %v116_v48  ;;  %v3380_v54 = vcombine.high %v109_v49, %v117_v50  ;;  %v92_v55 = vld [vmem:[#allocation5] sm:$0xff]  ;;  %v93_v57 = vld [vmem:[#allocation5 + $0x8] sm:$0xff]  ;;  %v3377_v59 = vcombine.low %v108_v47, %v116_v48  ;;  %v158_v26 = vld [vmem:[#allocation5 + $0x210] sm:$0xff] }
  0x4c   :  { %v100_v56 = vld [vmem:[#allocation5 + $0x40] sm:$0xff]  ;;  %v101_v58 = vld [vmem:[#allocation5 + $0x48] sm:$0xff]  ;;  %v3379_v60 = vcombine.low %v109_v49, %v117_v50  ;;  %v3448_v25 = vcombine.high %v175_v20, %v183_v21  ;;  %v166_v27 = vld [vmem:[#allocation5 + $0x250] sm:$0xff]  ;;  %v3445_v30 = vcombine.low %v174_v18, %v182_v19  ;;  %v3447_v31 = vcombine.low %v175_v20, %v183_v21 }
  0x4d   :  { %v3362_v61 = vcombine.high %v92_v55, %v100_v56  ;;  %v3364_v62 = vcombine.high %v93_v57, %v101_v58  ;;  %v3361_v4 = vcombine.low %v92_v55, %v100_v56  ;;  %v3363_v6 = vcombine.low %v93_v57, %v101_v58  ;;  %v159_v28 = vld [vmem:[#allocation5 + $0x218] sm:$0xff]  ;;  %v142_v33 = vld [vmem:[#allocation5 + $0x190] sm:$0xff]  ;;  %v208_v63 = vld [vmem:[#allocation5 + $0x3a0] sm:$0xff] }
  0x4e   :  { %867 = vmatpush1.bf16.msra.mxu0 %v3425_v35  ;;  %908 = vmatpush1.bf16.msra.mxu1 %v3427_v36  ;;  %v167_v29 = vld [vmem:[#allocation5 + $0x258] sm:$0xff]  ;;  %v3430_v32 = vcombine.high %v158_v26, %v166_v27  ;;  %v150_v35 = vld [vmem:[#allocation5 + $0x1d0] sm:$0xff]  ;;  %v216_v1 = vld [vmem:[#allocation5 + $0x3e0] sm:$0xff] }
  0x4f   :  { %868 = vmatprep.subr.bf16.mxu0 %v3410_v37  ;;  %909 = vmatprep.subr.bf16.mxu1 %v3412_v38  ;;  %v3432_v34 = vcombine.high %v159_v28, %v167_v29  ;;  %v143_v36 = vld [vmem:[#allocation5 + $0x198] sm:$0xff]  ;;  %v3429_v38 = vcombine.low %v158_v26, %v166_v27  ;;  %v126_v39 = vld [vmem:[#allocation5 + $0x110] sm:$0xff]  ;;  %v3431_v41 = vcombine.low %v159_v28, %v167_v29  ;;  %v217_v5 = vld [vmem:[#allocation5 + $0x3e8] sm:$0xff] }
  0x50   :  { %v151_v37 = vld [vmem:[#allocation5 + $0x1d8] sm:$0xff]  ;;  %v134_v40 = vld [vmem:[#allocation5 + $0x150] sm:$0xff]  ;;  %v3414_v42 = vcombine.high %v142_v33, %v150_v35  ;;  %v200_v9 = vld [vmem:[#allocation5 + $0x360] sm:$0xff]  ;;  %v3482_v12 = vcombine.high %v208_v63, %v216_v1 }
  0x51   :  { %v110_v47 = vld [vmem:[#allocation5 + $0x90] sm:$0xff]  ;;  %v3415_v49 = vcombine.low %v143_v36, %v151_v37  ;;  %v3398_v50 = vcombine.high %v126_v39, %v134_v40  ;;  %v193_v13 = vld [vmem:[#allocation5 + $0x328] sm:$0xff]  ;;  %v184_v18 = vld [vmem:[#allocation5 + $0x2e0] sm:$0xff] }
  0x52   :  { %869 = vmatpush1.bf16.msra.mxu0 %v3409_v43  ;;  %910 = vmatpush1.bf16.msra.mxu1 %v3411_v44  ;;  %v127_v43 = vld [vmem:[#allocation5 + $0x118] sm:$0xff]  ;;  %v118_v48 = vld [vmem:[#allocation5 + $0xd0] sm:$0xff]  ;;  %v177_v21 = vld [vmem:[#allocation5 + $0x2a8] sm:$0xff] }
  0x53   :  { %870 = vmatprep.subr.bf16.mxu0 %v3394_v45  ;;  %911 = vmatprep.subr.bf16.mxu1 %v3396_v46  ;;  %v135_v44 = vld [vmem:[#allocation5 + $0x158] sm:$0xff]  ;;  %v3416_v45 = vcombine.high %v143_v36, %v151_v37  ;;  %v3413_v46 = vcombine.low %v142_v33, %v150_v35  ;;  %v94_v55 = vld [vmem:[#allocation5 + $0x10] sm:$0xff]  ;;  %v3382_v58 = vcombine.high %v110_v47, %v118_v48  ;;  %v168_v26 = vld [vmem:[#allocation5 + $0x260] sm:$0xff] }
  0x54   :  { %v102_v56 = vld [vmem:[#allocation5 + $0x50] sm:$0xff]  ;;  %v3399_v57 = vcombine.low %v127_v43, %v135_v44  ;;  %v161_v29 = vld [vmem:[#allocation5 + $0x228] sm:$0xff]  ;;  %v144_v33 = vld [vmem:[#allocation5 + $0x1a0] sm:$0xff] }
  0x55   :  { %v3366_v3 = vcombine.high %v94_v55, %v102_v56  ;;  %v145_v37 = vld [vmem:[#allocation5 + $0x1a8] sm:$0xff] }
  0x56   :  { %871 = vmatpush1.bf16.msra.mxu0 %v3393_v51  ;;  %912 = vmatpush1.bf16.msra.mxu1 %v3395_v52  ;;  %v111_v51 = vld [vmem:[#allocation5 + $0x98] sm:$0xff] }
  0x57   :  { %872 = vmatprep.subr.bf16.mxu0 %v3378_v53  ;;  %913 = vmatprep.subr.bf16.mxu1 %v3380_v54  ;;  %v119_v52 = vld [vmem:[#allocation5 + $0xd8] sm:$0xff]  ;;  %v3400_v53 = vcombine.high %v127_v43, %v135_v44  ;;  %v3397_v54 = vcombine.low %v126_v39, %v134_v40 }
  0x58   :  { %v3383_v2 = vcombine.low %v111_v51, %v119_v52 }
  0x5a   :  { %873 = vmatpush1.bf16.msra.mxu0 %v3377_v59  ;;  %914 = vmatpush1.bf16.msra.mxu1 %v3379_v60  ;;  %v95_v59 = vld [vmem:[#allocation5 + $0x18] sm:$0xff] }
  0x5b   :  { %874 = vmatprep.subr.bf16.mxu0 %v3362_v61  ;;  %915 = vmatprep.subr.bf16.mxu1 %v3364_v62  ;;  %v103_v60 = vld [vmem:[#allocation5 + $0x58] sm:$0xff]  ;;  %v3384_v61 = vcombine.high %v111_v51, %v119_v52  ;;  %v3381_v62 = vcombine.low %v110_v47, %v118_v48 }
  0x5c   :  { %v3367_v10 = vcombine.low %v95_v59, %v103_v60 }
  0x5e   :  { %875 = vmatpush1.bf16.msra.mxu0 %v3361_v4  ;;  %916 = vmatpush1.bf16.msra.mxu1 %v3363_v6  ;;  %v209_v4 = vld [vmem:[#allocation5 + $0x3a8] sm:$0xff]  ;;  %v3368_v6 = vcombine.high %v95_v59, %v103_v60 }
  0x5f   :  { %942 = vmatprep.subr.bf16.mxu0 %v3478_v7  ;;  %983 = vmatprep.subr.bf16.mxu1 %v3480_v8  ;;  %v3365_v7 = vcombine.low %v94_v55, %v102_v56  ;;  %v192_v8 = vld [vmem:[#allocation5 + $0x320] sm:$0xff]  ;;  %v3483_v19 = vcombine.low %v209_v4, %v217_v5 }
  0x60   :  { %v3466_v20 = vcombine.high %v192_v8, %v200_v9 }
  0x61   :  { %893 = vmatmul.mubr.bf16.vlgmr.msra.gmra.mxu0 %v4199_v11  ;;  %934 = vmatmul.mubr.bf16.vlgmr.msra.gmra.mxu1 %v4199_v11 }
  0x62   :  { %943 = vmatpush1.bf16.msra.mxu0 %v3477_v14  ;;  %984 = vmatpush1.bf16.msra.mxu1 %v3479_v15  ;;  %v201_v14 = vld [vmem:[#allocation5 + $0x368] sm:$0xff]  ;;  %v3484_v15 = vcombine.high %v209_v4, %v217_v5 }
  0x63   :  { %944 = vmatprep.subr.bf16.mxu0 %v3462_v16  ;;  %985 = vmatprep.subr.bf16.mxu1 %v3464_v17  ;;  %v3481_v16 = vcombine.low %v208_v63, %v216_v1  ;;  %v176_v17 = vld [vmem:[#allocation5 + $0x2a0] sm:$0xff]  ;;  %v3467_v27 = vcombine.low %v193_v13, %v201_v14 }
  0x64   :  { %974 = vmatprep.mubr.bf16.mxu0 %v4136_v0  ;;  %1015 = vmatprep.mubr.bf16.mxu1 %v4136_v0  ;;  %v3450_v28 = vcombine.high %v176_v17, %v184_v18 }
  0x66   :  { %945 = vmatpush1.bf16.msra.mxu0 %v3461_v22  ;;  %986 = vmatpush1.bf16.msra.mxu1 %v3463_v23  ;;  %v185_v22 = vld [vmem:[#allocation5 + $0x2e8] sm:$0xff]  ;;  %v3468_v23 = vcombine.high %v193_v13, %v201_v14 }
  0x67   :  { %946 = vmatprep.subr.bf16.mxu0 %v3446_v24  ;;  %987 = vmatprep.subr.bf16.mxu1 %v3448_v25  ;;  %v3465_v24 = vcombine.low %v192_v8, %v200_v9  ;;  %v160_v25 = vld [vmem:[#allocation5 + $0x220] sm:$0xff]  ;;  %v3451_v35 = vcombine.low %v177_v21, %v185_v22 }
  0x68   :  { %v3434_v36 = vcombine.high %v160_v25, %v168_v26  ;;  %v3433_v40 = vcombine.low %v160_v25, %v168_v26 }
  0x6a   :  { %947 = vmatpush1.bf16.msra.mxu0 %v3445_v30  ;;  %988 = vmatpush1.bf16.msra.mxu1 %v3447_v31  ;;  %v169_v30 = vld [vmem:[#allocation5 + $0x268] sm:$0xff]  ;;  %v3452_v31 = vcombine.high %v177_v21, %v185_v22 }
  0x6b   :  { %948 = vmatprep.subr.bf16.mxu0 %v3430_v32  ;;  %989 = vmatprep.subr.bf16.mxu1 %v3432_v34  ;;  %v3449_v32 = vcombine.low %v176_v17, %v184_v18  ;;  %v152_v34 = vld [vmem:[#allocation5 + $0x1e0] sm:$0xff]  ;;  %v3436_v39 = vcombine.high %v161_v29, %v169_v30  ;;  %v3435_v43 = vcombine.low %v161_v29, %v169_v30 }
  0x6c   :  { %v3418_v44 = vcombine.high %v144_v33, %v152_v34  ;;  %v3417_v48 = vcombine.low %v144_v33, %v152_v34 }
  0x6e   :  { %949 = vmatpush1.bf16.msra.mxu0 %v3429_v38  ;;  %990 = vmatpush1.bf16.msra.mxu1 %v3431_v41  ;;  %v153_v38 = vld [vmem:[#allocation5 + $0x1e8] sm:$0xff]  ;;  %v128_v41 = vld [vmem:[#allocation5 + $0x120] sm:$0xff] }
  0x6f   :  { %950 = vmatprep.subr.bf16.mxu0 %v3414_v42  ;;  %991 = vmatprep.subr.bf16.mxu1 %v3416_v45  ;;  %v136_v42 = vld [vmem:[#allocation5 + $0x160] sm:$0xff]  ;;  %v129_v45 = vld [vmem:[#allocation5 + $0x128] sm:$0xff]  ;;  %v3420_v47 = vcombine.high %v145_v37, %v153_v38  ;;  %v3419_v51 = vcombine.low %v145_v37, %v153_v38 }
  0x70   :  { %v3402_v52 = vcombine.high %v128_v41, %v136_v42  ;;  %v3401_v56 = vcombine.low %v128_v41, %v136_v42 }
  0x72   :  { %951 = vmatpush1.bf16.msra.mxu0 %v3413_v46  ;;  %992 = vmatpush1.bf16.msra.mxu1 %v3415_v49  ;;  %v137_v46 = vld [vmem:[#allocation5 + $0x168] sm:$0xff]  ;;  %v112_v49 = vld [vmem:[#allocation5 + $0xa0] sm:$0xff] }
  0x73   :  { %952 = vmatprep.subr.bf16.mxu0 %v3398_v50  ;;  %993 = vmatprep.subr.bf16.mxu1 %v3400_v53  ;;  %v120_v50 = vld [vmem:[#allocation5 + $0xe0] sm:$0xff]  ;;  %v113_v53 = vld [vmem:[#allocation5 + $0xa8] sm:$0xff]  ;;  %v3404_v55 = vcombine.high %v129_v45, %v137_v46  ;;  %v3403_v59 = vcombine.low %v129_v45, %v137_v46  ;;  %v131_v46 = vld [vmem:[#allocation5 + $0x138] sm:$0xff] }
  0x74   :  { %v3386_v60 = vcombine.high %v112_v49, %v120_v50  ;;  %v3385_v1 = vcombine.low %v112_v49, %v120_v50  ;;  %v114_v50 = vld [vmem:[#allocation5 + $0xb0] sm:$0xff] }
  0x76   :  { %953 = vmatpush1.bf16.msra.mxu0 %v3397_v54  ;;  %994 = vmatpush1.bf16.msra.mxu1 %v3399_v57  ;;  %v121_v54 = vld [vmem:[#allocation5 + $0xe8] sm:$0xff]  ;;  %v96_v57 = vld [vmem:[#allocation5 + $0x20] sm:$0xff] }
  0x77   :  { %954 = vmatprep.subr.bf16.mxu0 %v3382_v58  ;;  %995 = vmatprep.subr.bf16.mxu1 %v3384_v61  ;;  %v104_v58 = vld [vmem:[#allocation5 + $0x60] sm:$0xff]  ;;  %v97_v61 = vld [vmem:[#allocation5 + $0x28] sm:$0xff]  ;;  %v3388_v63 = vcombine.high %v113_v53, %v121_v54  ;;  %v3387_v4 = vcombine.low %v113_v53, %v121_v54  ;;  %v115_v54 = vld [vmem:[#allocation5 + $0xb8] sm:$0xff] }
  0x78   :  { %v3370_v5 = vcombine.high %v96_v57, %v104_v58  ;;  %v3369_v9 = vcombine.low %v96_v57, %v104_v58  ;;  %v98_v58 = vld [vmem:[#allocation5 + $0x30] sm:$0xff] }
  0x7a   :  { %955 = vmatpush1.bf16.msra.mxu0 %v3381_v62  ;;  %996 = vmatpush1.bf16.msra.mxu1 %v3383_v2  ;;  %v105_v62 = vld [vmem:[#allocation5 + $0x68] sm:$0xff]  ;;  %v210_v2 = vld [vmem:[#allocation5 + $0x3b0] sm:$0xff] }
  0x7b   :  { %956 = vmatprep.subr.bf16.mxu0 %v3366_v3  ;;  %997 = vmatprep.subr.bf16.mxu1 %v3368_v6  ;;  %v218_v3 = vld [vmem:[#allocation5 + $0x3f0] sm:$0xff]  ;;  %v211_v6 = vld [vmem:[#allocation5 + $0x3b8] sm:$0xff]  ;;  %v3372_v8 = vcombine.high %v97_v61, %v105_v62  ;;  %v3371_v13 = vcombine.low %v97_v61, %v105_v62 }
  0x7c   :  { %v3486_v14 = vcombine.high %v210_v2, %v218_v3  ;;  %v3485_v18 = vcombine.low %v210_v2, %v218_v3  ;;  %v99_v62 = vld [vmem:[#allocation5 + $0x38] sm:$0xff] }
  0x7e   :  { %957 = vmatpush1.bf16.msra.mxu0 %v3365_v7  ;;  %998 = vmatpush1.bf16.msra.mxu1 %v3367_v10  ;;  %v219_v7 = vld [vmem:[#allocation5 + $0x3f8] sm:$0xff]  ;;  %v194_v10 = vld [vmem:[#allocation5 + $0x330] sm:$0xff] }
  0x7f   :  { %1024 = vmatprep.subr.bf16.mxu0 %v3482_v12  ;;  %1065 = vmatprep.subr.bf16.mxu1 %v3484_v15  ;;  %v202_v12 = vld [vmem:[#allocation5 + $0x370] sm:$0xff]  ;;  %v195_v15 = vld [vmem:[#allocation5 + $0x338] sm:$0xff]  ;;  %v3488_v17 = vcombine.high %v211_v6, %v219_v7  ;;  %v3487_v21 = vcombine.low %v211_v6, %v219_v7 }
  0x80   :  { %v3470_v22 = vcombine.high %v194_v10, %v202_v12  ;;  %v3469_v26 = vcombine.low %v194_v10, %v202_v12  ;;  %v3806_v10 = vld [vmem:[#allocation10 + $0x38] sm:$0xff]  }
  0x81   :  { %975 = vmatmul.mubr.bf16.vlgmr.msra.gmra.mxu0 %v4199_v11  ;;  %1016 = vmatmul.mubr.bf16.vlgmr.msra.gmra.mxu1 %v4199_v11  ;;  %v3807_v12 = vld [vmem:[#allocation10 + $0xb8] sm:$0xff]  }
  0x82   :  { %1025 = vmatpush1.bf16.msra.mxu0 %v3481_v16  ;;  %1066 = vmatpush1.bf16.msra.mxu1 %v3483_v19  ;;  %v203_v16 = vld [vmem:[#allocation5 + $0x378] sm:$0xff]  ;;  %v178_v19 = vld [vmem:[#allocation5 + $0x2b0] sm:$0xff] }
  0x83   :  { %1026 = vmatprep.subr.bf16.mxu0 %v3466_v20  ;;  %1067 = vmatprep.subr.bf16.mxu1 %v3468_v23  ;;  %v186_v20 = vld [vmem:[#allocation5 + $0x2f0] sm:$0xff]  ;;  %v179_v23 = vld [vmem:[#allocation5 + $0x2b8] sm:$0xff]  ;;  %v3472_v25 = vcombine.high %v195_v15, %v203_v16  ;;  %v3471_v29 = vcombine.low %v195_v15, %v203_v16 }
  0x84   :  { %1056 = vmatprep.mubr.bf16.mxu0 %v4136_v0  ;;  %1097 = vmatprep.mubr.bf16.mxu1 %v4136_v0  ;;  %v3454_v30 = vcombine.high %v178_v19, %v186_v20  ;;  %v3453_v34 = vcombine.low %v178_v19, %v186_v20  ;;  %v3810_v15 = vld [vmem:[#allocation10 + $0x30] sm:$0xff]   ;;  %v3814_v19 = vld [vmem:[#allocation10 + $0x28] sm:$0xff]   ;;  %v3816_v20 = vld [vmem:[#allocation10 + $0x60] sm:$0xff]  }
  0x85   :  { %v3811_v16 = vld [vmem:[#allocation10 + $0xb0] sm:$0xff]  }
  0x86   :  { %1027 = vmatpush1.bf16.msra.mxu0 %v3465_v24  ;;  %1068 = vmatpush1.bf16.msra.mxu1 %v3467_v27  ;;  %v187_v24 = vld [vmem:[#allocation5 + $0x2f8] sm:$0xff]  ;;  %v162_v27 = vld [vmem:[#allocation5 + $0x230] sm:$0xff] }
  0x87   :  { %1028 = vmatprep.subr.bf16.mxu0 %v3450_v28  ;;  %1069 = vmatprep.subr.bf16.mxu1 %v3452_v31  ;;  %v170_v28 = vld [vmem:[#allocation5 + $0x270] sm:$0xff]  ;;  %v163_v31 = vld [vmem:[#allocation5 + $0x238] sm:$0xff]  ;;  %v3456_v33 = vcombine.high %v179_v23, %v187_v24  ;;  %v3455_v37 = vcombine.low %v179_v23, %v187_v24  ;;  %v3819_v23 = vld [vmem:[#allocation10 + $0xa0] sm:$0xff]  }
  0x88   :  { %v3438_v38 = vcombine.high %v162_v27, %v170_v28  ;;  %v3437_v42 = vcombine.low %v162_v27, %v170_v28  ;;  %v3820_v24 = vld [vmem:[#allocation10 + $0x58] sm:$0xff]   ;;  %v3824_v28 = vld [vmem:[#allocation10 + $0x50] sm:$0xff]  }
  0x89   :  { %v3823_v27 = vld [vmem:[#allocation10 + $0x98] sm:$0xff]  }
  0x8a   :  { %1029 = vmatpush1.bf16.msra.mxu0 %v3449_v32  ;;  %1070 = vmatpush1.bf16.msra.mxu1 %v3451_v35  ;;  %v171_v32 = vld [vmem:[#allocation5 + $0x278] sm:$0xff]  ;;  %v146_v35 = vld [vmem:[#allocation5 + $0x1b0] sm:$0xff] }
  0x8b   :  { %1030 = vmatprep.subr.bf16.mxu0 %v3434_v36  ;;  %1071 = vmatprep.subr.bf16.mxu1 %v3436_v39  ;;  %v154_v36 = vld [vmem:[#allocation5 + $0x1f0] sm:$0xff]  ;;  %v147_v39 = vld [vmem:[#allocation5 + $0x1b8] sm:$0xff]  ;;  %v3440_v41 = vcombine.high %v163_v31, %v171_v32  ;;  %v3439_v45 = vcombine.low %v163_v31, %v171_v32 }
  0x8c   :  { %v3421_v49 = vcombine.low %v146_v35, %v154_v36  ;;  %v3826_v31 = vld [vmem:[#allocation10 + $0x10] sm:$0xff]  }
  0x8d   :  { %v3827_v32 = vld [vmem:[#allocation10 + $0x90] sm:$0xff]  }
  0x8e   :  { %1031 = vmatpush1.bf16.msra.mxu0 %v3433_v40  ;;  %1072 = vmatpush1.bf16.msra.mxu1 %v3435_v43  ;;  %v155_v40 = vld [vmem:[#allocation5 + $0x1f8] sm:$0xff]  ;;  %v130_v43 = vld [vmem:[#allocation5 + $0x130] sm:$0xff] }
  0x8f   :  { %1032 = vmatprep.subr.bf16.mxu0 %v3418_v44  ;;  %1073 = vmatprep.subr.bf16.mxu1 %v3420_v47  ;;  %v138_v44 = vld [vmem:[#allocation5 + $0x170] sm:$0xff]  ;;  %v139_v47 = vld [vmem:[#allocation5 + $0x178] sm:$0xff] }
  0x90   :  { %v3406_v53 = vcombine.high %v130_v43, %v138_v44  ;;  %v3405_v57 = vcombine.low %v130_v43, %v138_v44 }
  0x92   :  { %1033 = vmatpush1.bf16.msra.mxu0 %v3417_v48  ;;  %1074 = vmatpush1.bf16.msra.mxu1 %v3419_v51  ;;  %v3424_v48 = vcombine.high %v147_v39, %v155_v40  ;;  %v122_v51 = vld [vmem:[#allocation5 + $0xf0] sm:$0xff] }
  0x93   :  { %1034 = vmatprep.subr.bf16.mxu0 %v3402_v52  ;;  %1075 = vmatprep.subr.bf16.mxu1 %v3404_v55  ;;  %v3423_v52 = vcombine.low %v147_v39, %v155_v40  ;;  %v123_v55 = vld [vmem:[#allocation5 + $0xf8] sm:$0xff]  ;;  %v3390_v61 = vcombine.high %v114_v50, %v122_v51  ;;  %v3389_v2 = vcombine.low %v114_v50, %v122_v51  ;;  %v3828_v40 = vld [vmem:[#allocation10 + $0x48] sm:$0xff]  }
  0x94   :  { %v3391_v3 = vcombine.low %v115_v54, %v123_v55 }
  0x96   :  { %1035 = vmatpush1.bf16.msra.mxu0 %v3401_v56  ;;  %1076 = vmatpush1.bf16.msra.mxu1 %v3403_v59  ;;  %v3408_v56 = vcombine.high %v131_v46, %v139_v47  ;;  %v106_v59 = vld [vmem:[#allocation5 + $0x70] sm:$0xff] }
  0x97   :  { %1036 = vmatprep.subr.bf16.mxu0 %v3386_v60  ;;  %1077 = vmatprep.subr.bf16.mxu1 %v3388_v63  ;;  %v3407_v60 = vcombine.low %v131_v46, %v139_v47  ;;  %v107_v63 = vld [vmem:[#allocation5 + $0x78] sm:$0xff]  ;;  %v3373_v6 = vcombine.low %v98_v58, %v106_v59 }
  0x98   :  { %v3375_v7 = vcombine.low %v99_v62, %v107_v63 }
  0x9a   :  { %1037 = vmatpush1.bf16.msra.mxu0 %v3385_v1  ;;  %1078 = vmatpush1.bf16.msra.mxu1 %v3387_v4  ;;  %v3392_v1 = vcombine.high %v115_v54, %v123_v55  ;;  %v3374_v4 = vcombine.high %v98_v58, %v106_v59  ;;  %v3832_v55 = vld [vmem:[#allocation10 + $0x40] sm:$0xff]  }
  0x9b   :  { %1038 = vmatprep.subr.bf16.mxu0 %v3370_v5  ;;  %1079 = vmatprep.subr.bf16.mxu1 %v3372_v8  ;;  %v3376_v5 = vcombine.high %v99_v62, %v107_v63  ;;  %v3804_v8 = vld [vmem:[#allocation10 + $0x78] sm:$0xff]   ;;  %v3834_v59 = vld [vmem:[#allocation10] sm:$0xff]  }
  0x9e   :  { %1039 = vmatpush1.bf16.msra.mxu0 %v3369_v9  ;;  %1080 = vmatpush1.bf16.msra.mxu1 %v3371_v13  ;;  %v3805_v9 = vld [vmem:[#allocation10 + $0xf8] sm:$0xff]   ;;  %v3808_v13 = vld [vmem:[#allocation10 + $0x70] sm:$0xff]  }
  0x9f   :  { %1106 = vmatprep.subr.bf16.mxu0 %v3486_v14  ;;  %1147 = vmatprep.subr.bf16.mxu1 %v3488_v17  ;;  %v3809_v14 = vld [vmem:[#allocation10 + $0xf0] sm:$0xff]   ;;  %v3812_v17 = vld [vmem:[#allocation10 + $0x68] sm:$0xff]  }
  0xa1   :  { %1057 = vmatmul.mubr.bf16.vlgmr.msra.gmra.mxu0 %v4199_v11  ;;  %1098 = vmatmul.mubr.bf16.vlgmr.msra.gmra.mxu1 %v4199_v11 }
  0xa2   :  { %1107 = vmatpush1.bf16.msra.mxu0 %v3485_v18  ;;  %1148 = vmatpush1.bf16.msra.mxu1 %v3487_v21  ;;  %v3813_v18 = vld [vmem:[#allocation10 + $0xe8] sm:$0xff]   ;;  %v3817_v21 = vld [vmem:[#allocation10 + $0xe0] sm:$0xff]  }
  0xa3   :  { %1108 = vmatprep.subr.bf16.mxu0 %v3470_v22  ;;  %1149 = vmatprep.subr.bf16.mxu1 %v3472_v25  ;;  %v3818_v22 = vld [vmem:[#allocation10 + $0x20] sm:$0xff]   ;;  %v3821_v25 = vld [vmem:[#allocation10 + $0xd8] sm:$0xff]  }
  0xa4   :  { %1138 = vmatprep.mubr.bf16.mxu0 %v4136_v0  ;;  %1179 = vmatprep.mubr.bf16.mxu1 %v4136_v0  ;;  %v3422_v0 = vcombine.high %v146_v35, %v154_v36 }
  0xa6   :  { %1109 = vmatpush1.bf16.msra.mxu0 %v3469_v26  ;;  %1150 = vmatpush1.bf16.msra.mxu1 %v3471_v29  ;;  %v3822_v26 = vld [vmem:[#allocation10 + $0x18] sm:$0xff]   ;;  %v3825_v29 = vld [vmem:[#allocation10 + $0xd0] sm:$0xff]  }
  0xa7   :  { %1110 = vmatprep.subr.bf16.mxu0 %v3454_v30  ;;  %1151 = vmatprep.subr.bf16.mxu1 %v3456_v33 }
  0xaa   :  { %1111 = vmatpush1.bf16.msra.mxu0 %v3453_v34  ;;  %1152 = vmatpush1.bf16.msra.mxu1 %v3455_v37 }
  0xab   :  { %1112 = vmatprep.subr.bf16.mxu0 %v3438_v38  ;;  %1153 = vmatprep.subr.bf16.mxu1 %v3440_v41  ;;  %v3829_v41 = vld [vmem:[#allocation10 + $0xc8] sm:$0xff]  }
  0xae   :  { %1113 = vmatpush1.bf16.msra.mxu0 %v3437_v42  ;;  %1154 = vmatpush1.bf16.msra.mxu1 %v3439_v45  ;;  %v3830_v45 = vld [vmem:[#allocation10 + $0x8] sm:$0xff]  }
  0xaf   :  { %1114 = vmatprep.subr.bf16.mxu0 %v3422_v0  ;;  %1155 = vmatprep.subr.bf16.mxu1 %v3424_v48  ;;  %v3831_v0 = vld [vmem:[#allocation10 + $0x88] sm:$0xff]  }
  0xb2   :  { %1115 = vmatpush1.bf16.msra.mxu0 %v3421_v49  ;;  %1156 = vmatpush1.bf16.msra.mxu1 %v3423_v52 }
  0xb3   :  { %1116 = vmatprep.subr.bf16.mxu0 %v3406_v53  ;;  %1157 = vmatprep.subr.bf16.mxu1 %v3408_v56  ;;  %v3833_v56 = vld [vmem:[#allocation10 + $0xc0] sm:$0xff]  }
  0xb6   :  { %1117 = vmatpush1.bf16.msra.mxu0 %v3405_v57  ;;  %1158 = vmatpush1.bf16.msra.mxu1 %v3407_v60  ;;  %v3835_v60 = vld [vmem:[#allocation10 + $0x80] sm:$0xff]  }
  0xb7   :  { %1118 = vmatprep.subr.bf16.mxu0 %v3390_v61  ;;  %1159 = vmatprep.subr.bf16.mxu1 %v3392_v1 }
  0xba   :  { %1119 = vmatpush1.bf16.msra.mxu0 %v3389_v2  ;;  %1160 = vmatpush1.bf16.msra.mxu1 %v3391_v3 }
  0xbb   :  { %1120 = vmatprep.subr.bf16.mxu0 %v3374_v4  ;;  %1161 = vmatprep.subr.bf16.mxu1 %v3376_v5  ;;  %v3836_v4 = vld [vmem:[#allocation10 + $0x178] sm:$0xff]  }
  0xbc   :  { %v3837_v5 = vld [vmem:[#allocation10 + $0x1f8] sm:$0xff]  }
  0xbe   :  { %1121 = vmatpush1.bf16.msra.mxu0 %v3373_v6  ;;  %1162 = vmatpush1.bf16.msra.mxu1 %v3375_v7 }
  0xbf   :  { %3617 = vmatprep.subr.bf16.mxu0 %v3804_v8  ;;  %3639 = vmatprep.subr.bf16.mxu1 %v3805_v9 }
  0xc1   :  { %1139 = vmatmul.mubr.bf16.vlgmr.msra.gmra.mxu0 %v4199_v11  ;;  %1180 = vmatmul.mubr.bf16.vlgmr.msra.gmra.mxu1 %v4199_v11  ;;  %v3815_v11 = vld [vmem:[#allocation10 + $0xa8] sm:$0xff]  }
  0xc2   :  { %3618 = vmatpush3.bf16.msra.mxu0 %v3806_v10  ;;  %3640 = vmatpush3.bf16.msra.mxu1 %v3807_v12 }
  0xc3   :  { %3619 = vmatprep.subr.bf16.mxu0 %v3808_v13  ;;  %3641 = vmatprep.subr.bf16.mxu1 %v3809_v14 }
  0xc6   :  { %3620 = vmatpush3.bf16.msra.mxu0 %v3810_v15  ;;  %3642 = vmatpush3.bf16.msra.mxu1 %v3811_v16 }
  0xc7   :  { %3621 = vmatprep.subr.bf16.mxu0 %v3812_v17  ;;  %3643 = vmatprep.subr.bf16.mxu1 %v3813_v18 }
  0xca   :  { %3622 = vmatpush3.bf16.msra.mxu0 %v3814_v19  ;;  %3644 = vmatpush3.bf16.msra.mxu1 %v3815_v11 }
  0xcb   :  { %3623 = vmatprep.subr.bf16.mxu0 %v3816_v20  ;;  %3645 = vmatprep.subr.bf16.mxu1 %v3817_v21 }
  0xce   :  { %3624 = vmatpush3.bf16.msra.mxu0 %v3818_v22  ;;  %3646 = vmatpush3.bf16.msra.mxu1 %v3819_v23 }
  0xcf   :  { %3625 = vmatprep.subr.bf16.mxu0 %v3820_v24  ;;  %3647 = vmatprep.subr.bf16.mxu1 %v3821_v25 }
  0xd2   :  { %3626 = vmatpush3.bf16.msra.mxu0 %v3822_v26  ;;  %3648 = vmatpush3.bf16.msra.mxu1 %v3823_v27 }
  0xd3   :  { %3627 = vmatprep.subr.bf16.mxu0 %v3824_v28  ;;  %3649 = vmatprep.subr.bf16.mxu1 %v3825_v29 }
  0xd6   :  { %3628 = vmatpush3.bf16.msra.mxu0 %v3826_v31  ;;  %3650 = vmatpush3.bf16.msra.mxu1 %v3827_v32 }
  0xd7   :  { %3629 = vmatprep.subr.bf16.mxu0 %v3828_v40  ;;  %3651 = vmatprep.subr.bf16.mxu1 %v3829_v41 }
  0xda   :  { %3630 = vmatpush3.bf16.msra.mxu0 %v3830_v45  ;;  %3652 = vmatpush3.bf16.msra.mxu1 %v3831_v0 }
  0xdb   :  { %3631 = vmatprep.subr.bf16.mxu0 %v3832_v55  ;;  %3653 = vmatprep.subr.bf16.mxu1 %v3833_v56 }
  0xde   :  { %3632 = vmatpush3.bf16.msra.mxu0 %v3834_v59  ;;  %3654 = vmatpush3.bf16.msra.mxu1 %v3835_v60 }
  0xdf   :  { %3661 = vmatprep.subr.bf16.mxu0 %v3836_v4  ;;  %3683 = vmatprep.subr.bf16.mxu1 %v3837_v5 }
 0x121   :  { %v4215_v30 = vpop.f32.mrf.mxu0  ;;  %v4218_v34 = vpop.f32.mrf.mxu1 }
 0x122   :  { %v1192_v33 = vrot.slane %v4215_v30, 4  ;;  %v1204_v35 = vrot.slane %v4218_v34, 4 }
 0x123   :  { %v4221_v36 = vpop.f32.mrf.mxu0  ;;  %v4225_v39 = vpop.f32.mrf.mxu1 }
 0x124   :  { %v1193_v37 = vadd.f32 %v1192_v33, %v4215_v30  ;;  %v1198_v38 = vrot.slane %v4221_v36, 4  ;;  %v1205_v42 = vadd.f32 %v1204_v35, %v4218_v34  ;;  %v1210_v43 = vrot.slane %v4225_v39, 4 }
 0x125   :  { %v898_v44 = vpop.f32.mrf.mxu0  ;;  %v939_v48 = vpop.f32.mrf.mxu1 }
 0x126   :  { %v1194_v46 = vrot.slane %v1193_v37, 2  ;;  %v1199_v47 = vadd.f32 %v1198_v38, %v4221_v36  ;;  %v1206_v49 = vrot.slane %v1205_v42, 2  ;;  %v1211_v50 = vadd.f32 %v1210_v43, %v4225_v39 }
 0x127   :  { %v899_v51 = vpop.f32.mrf.mxu0  ;;  %v940_v54 = vpop.f32.mrf.mxu1 }
 0x128   :  { %v1195_v52 = vadd.f32 %v1194_v46, %v1193_v37  ;;  %v1200_v53 = vrot.slane %v1199_v47, 2  ;;  %v1207_v57 = vadd.f32 %v1206_v49, %v1205_v42  ;;  %v1212_v58 = vrot.slane %v1211_v50, 2 }
 0x12a   :  { %v1201_v61 = vadd.f32 %v1200_v53, %v1199_v47  ;;  %v1213_v62 = vadd.f32 %v1212_v58, %v1211_v50  ;;  %v1196_v63 = vrot.slane %v1195_v52, 1  ;;  %v1208_v2 = vrot.slane %v1207_v57, 1 }
 0x12c   :  { %v1202_v1 = vrot.slane %v1201_v61, 1  ;;  %v1214_v3 = vrot.slane %v1213_v62, 1  ;;  %v1197_v8 = vadd.f32 %v1196_v63, %v1195_v52  ;;  %v1209_v9 = vadd.f32 %v1208_v2, %v1207_v57 }
 0x12e   :  { %v1203_v6 = vadd.f32 %v1202_v1, %v1201_v61  ;;  %v1215_v7 = vadd.f32 %v1214_v3, %v1213_v62  ;;  %v4235_v13 = vmul.f32 0.125, %v1197_v8  ;;  %v4237_v14 = vmul.f32 0.125, %v1209_v9 }
 0x130   :  { %v4231_v10 = vmul.f32 0.125, %v1203_v6  ;;  %v4233_v12 = vmul.f32 0.125, %v1215_v7  ;;  %v1305_v17 = vsub.f32 %v4215_v30, %v4235_v13  ;;  %v1307_v18 = vsub.f32 %v4218_v34, %v4237_v14 }
 0x132   :  { %v1306_v15 = vsub.f32 %v4221_v36, %v4231_v10  ;;  %v1308_v16 = vsub.f32 %v4225_v39, %v4233_v12  ;;  %v1321_v20 = vmul.f32 %v1305_v17, %v1305_v17  ;;  %v1323_v21 = vmul.f32 %v1307_v18, %v1307_v18 }
 0x134   :  { %v1322_v19 = vmul.f32 %v1306_v15, %v1306_v15  ;;  %v1324_v11 = vmul.f32 %v1308_v16, %v1308_v16  ;;  %v1337_v24 = vrot.slane %v1321_v20, 4  ;;  %v1349_v25 = vrot.slane %v1323_v21, 4 }
 0x136   :  { %v1343_v22 = vrot.slane %v1322_v19, 4  ;;  %v1355_v23 = vrot.slane %v1324_v11, 4  ;;  %v1338_v35 = vadd.f32 %v1337_v24, %v1321_v20  ;;  %v1350_v41 = vadd.f32 %v1349_v25, %v1323_v21 }
 0x138   :  { %v1344_v27 = vadd.f32 %v1343_v22, %v1322_v19  ;;  %v1356_v31 = vadd.f32 %v1355_v23, %v1324_v11  ;;  %v1339_v52 = vrot.slane %v1338_v35, 2  ;;  %v1351_v56 = vrot.slane %v1350_v41, 2 }
 0x13a   :  { %v1345_v45 = vrot.slane %v1344_v27, 2  ;;  %v1357_v48 = vrot.slane %v1356_v31, 2  ;;  %v1340_v2 = vadd.f32 %v1339_v52, %v1338_v35  ;;  %v1352_v5 = vadd.f32 %v1351_v56, %v1350_v41 }
 0x13c   :  { %v1346_v59 = vadd.f32 %v1345_v45, %v1344_v27  ;;  %v1358_v62 = vadd.f32 %v1357_v48, %v1356_v31  ;;  %v1341_v19 = vrot.slane %v1340_v2, 1  ;;  %v1353_v21 = vrot.slane %v1352_v5, 1 }
 0x13e   :  { %v1347_v8 = vrot.slane %v1346_v59, 1  ;;  %v1359_v16 = vrot.slane %v1358_v62, 1  ;;  %v1342_v35 = vadd.f32 %v1341_v19, %v1340_v2  ;;  %v1354_v41 = vadd.f32 %v1353_v21, %v1352_v5 }
 0x140   :  { %v1348_v24 = vadd.f32 %v1347_v8, %v1346_v59  ;;  %v1435_v52 = vmul.f32 0.125, %v1354_v41 }
 0x141   :  { %v4247_v26 = vpop.f32.mrf.mxu0  ;;  %v4250_v29 = vpop.f32.mrf.mxu1 }
 0x142   :  { %v1216_v28 = vrot.slane %v4247_v26, 4  ;;  %v1228_v32 = vrot.slane %v4250_v29, 4 }
 0x143   :  { %v4253_v33 = vpop.f32.mrf.mxu0  ;;  %v4257_v40 = vpop.f32.mrf.mxu1 }
 0x144   :  { %v1217_v37 = vadd.f32 %v1216_v28, %v4247_v26  ;;  %v1222_v38 = vrot.slane %v4253_v33, 4  ;;  %v1229_v42 = vadd.f32 %v1228_v32, %v4250_v29  ;;  %v1234_v43 = vrot.slane %v4257_v40, 4 }
 0x145   :  { %v980_v44 = vpop.f32.mrf.mxu0  ;;  %v1021_v47 = vpop.f32.mrf.mxu1  ;;  %v1360_v28 = vadd.f32 %v1359_v16, %v1358_v62 }
 0x146   :  { %v1218_v0 = vrot.slane %v1217_v37, 2  ;;  %v1223_v46 = vadd.f32 %v1222_v38, %v4253_v33  ;;  %v1230_v49 = vrot.slane %v1229_v42, 2  ;;  %v1235_v50 = vadd.f32 %v1234_v43, %v4257_v40 }
 0x147   :  { %v981_v51 = vpop.f32.mrf.mxu0  ;;  %v1022_v55 = vpop.f32.mrf.mxu1  ;;  %v1434_v44 = vmul.f32 0.125, %v1348_v24 }
 0x148   :  { %v1219_v53 = vadd.f32 %v1218_v0, %v1217_v37  ;;  %v1224_v54 = vrot.slane %v1223_v46, 2  ;;  %v1231_v57 = vadd.f32 %v1230_v49, %v1229_v42  ;;  %v1236_v58 = vrot.slane %v1235_v50, 2 }
 0x149   :  { %v1433_v49 = vmul.f32 0.125, %v1342_v35  ;;  %v1450_v55 = vadd.f32 1e-05, %v1434_v44 }
 0x14a   :  { %v1220_v60 = vrot.slane %v1219_v53, 1  ;;  %v1225_v61 = vadd.f32 %v1224_v54, %v1223_v46  ;;  %v1232_v63 = vrot.slane %v1231_v57, 1  ;;  %v1237_v1 = vadd.f32 %v1236_v58, %v1235_v50 }
 0x14b   :  { %v1436_v46 = vmul.f32 0.125, %v1360_v28  ;;  %3932 = vrsqrt.f32 %v1450_v55 }
 0x14c   :  { %v1221_v3 = vadd.f32 %v1220_v60, %v1219_v53  ;;  %v1226_v4 = vrot.slane %v1225_v61, 1  ;;  %v1233_v6 = vadd.f32 %v1232_v63, %v1231_v57  ;;  %v1238_v7 = vrot.slane %v1237_v1, 1 }
 0x14d   :  { %v1452_v58 = vadd.f32 1e-05, %v1436_v46  ;;  %v1504_v46 = vlaneseq }
 0x14e   :  { %v4263_v9 = vmul.f32 0.125, %v1221_v3  ;;  %v1227_v15 = vadd.f32 %v1226_v4, %v1225_v61  ;;  %v4265_v17 = vmul.f32 0.125, %v1233_v6  ;;  %v1239_v18 = vadd.f32 %v1238_v7, %v1237_v1 }
 0x14f   :  { %v1449_v61 = vadd.f32 1e-05, %v1433_v49  ;;  %v1451_v1 = vadd.f32 1e-05, %v1435_v52  ;;  %3934 = vrsqrt.f32 %v1452_v58 }
 0x150   :  { %v1309_v11 = vsub.f32 %v4247_v26, %v4263_v9  ;;  %v4269_v20 = vmul.f32 0.125, %v1227_v15  ;;  %v1311_v22 = vsub.f32 %v4250_v29, %v4265_v17  ;;  %v4273_v23 = vmul.f32 0.125, %v1239_v18 }
 0x151   :  { %3936 = vrsqrt.f32 %v1449_v61 }
 0x152   :  { %v1325_v25 = vmul.f32 %v1309_v11, %v1309_v11  ;;  %v1310_v27 = vsub.f32 %v4253_v33, %v4269_v20  ;;  %v1327_v31 = vmul.f32 %v1311_v22, %v1311_v22  ;;  %v1312_v32 = vsub.f32 %v4257_v40, %v4273_v23 }
 0x153   :  { %3938 = vrsqrt.f32 %v1451_v1 }
 0x154   :  { %v1361_v37 = vrot.slane %v1325_v25, 4  ;;  %v1326_v38 = vmul.f32 %v1310_v27, %v1310_v27  ;;  %v1373_v42 = vrot.slane %v1327_v31, 4  ;;  %v1328_v43 = vmul.f32 %v1312_v32, %v1312_v32 }
 0x156   :  { %v1362_v45 = vadd.f32 %v1361_v37, %v1325_v25  ;;  %v1367_v0 = vrot.slane %v1326_v38, 4  ;;  %v1374_v47 = vadd.f32 %v1373_v42, %v1327_v31  ;;  %v1379_v48 = vrot.slane %v1328_v43, 4 }
 0x157   :  { %v4137_v25 = vmov 1966171168  }
 0x158   :  { %v1363_v50 = vrot.slane %v1362_v45, 2  ;;  %v1368_v51 = vadd.f32 %v1367_v0, %v1326_v38  ;;  %v1375_v53 = vrot.slane %v1374_v47, 2  ;;  %v1380_v54 = vadd.f32 %v1379_v48, %v1328_v43 }
 0x159   :  { %v1502_v27 = vunpack.c.l.s4 %v4137_v25 }
 0x15a   :  { %v1364_v56 = vadd.f32 %v1363_v50, %v1362_v45  ;;  %v1369_v57 = vrot.slane %v1368_v51, 2  ;;  %v1376_v59 = vadd.f32 %v1375_v53, %v1374_v47  ;;  %v1381_v60 = vrot.slane %v1380_v54, 2 }
 0x15b   :  { %v1503_v58 = vunpack.c.0.s8 %v1502_v27 }
 0x15c   :  { %v1365_v62 = vrot.slane %v1364_v56, 1  ;;  %v1370_v63 = vadd.f32 %v1369_v57, %v1368_v51  ;;  %v1377_v2 = vrot.slane %v1376_v59, 1  ;;  %v1382_v3 = vadd.f32 %v1381_v60, %v1380_v54 }
 0x15e   :  { %v1366_v4 = vadd.f32 %v1365_v62, %v1364_v56  ;;  %v1371_v5 = vrot.slane %v1370_v63, 1  ;;  %v1378_v6 = vadd.f32 %v1377_v2, %v1376_v59  ;;  %v1383_v7 = vrot.slane %v1382_v3, 1  ;;  %v3933_v62 = vpop.eup %3932 }
 0x15f   :  { %v1505_v59 = vshrl.u32 %v1504_v46, 7  ;;  %v3935_v2 = vpop.eup %3934 }
 0x160   :  { %v1437_v8 = vmul.f32 0.125, %v1366_v4  ;;  %v1372_v15 = vadd.f32 %v1371_v5, %v1370_v63  ;;  %v1439_v16 = vmul.f32 0.125, %v1378_v6  ;;  %v1384_v18 = vadd.f32 %v1383_v7, %v1382_v3  ;;  %v3937_v5 = vpop.eup %3936 }
 0x161   :  { %v4279_v19 = vpop.f32.mrf.mxu0  ;;  %v4282_v24 = vpop.f32.mrf.mxu1 }
 0x162   :  { %4559 = vst [vmem:[#allocation16_spill] sm:$0xff] %v4279_v19  ;;  %v1453_v11 = vadd.f32 1e-05, %v1437_v8  ;;  %v1438_v21 = vmul.f32 0.125, %v1372_v15  ;;  %v1240_v22 = vrot.slane %v4279_v19, 4  ;;  %4560 = vst [vmem:[#allocation17_spill] sm:$0xff] %v4282_v24  ;;  %v3939_v8 = vpop.eup %3938  ;;  %v4295_v15 = vsub.s32 %v1503_v58, %v1505_v59 }
 0x163   :  { %v1455_v28 = vadd.f32 1e-05, %v1439_v16  ;;  %v1440_v31 = vmul.f32 0.125, %v1384_v18  ;;  %v1252_v32 = vrot.slane %v4282_v24, 4  ;;  %v4285_v35 = vpop.f32.mrf.mxu0  ;;  %v4289_v42 = vpop.f32.mrf.mxu1 }
 0x164   :  { %4561 = vst [vmem:[#allocation18_spill] sm:$0xff] %v4285_v35  ;;  %3940 = vrsqrt.f32 %v1453_v11  ;;  %v1454_v37 = vadd.f32 1e-05, %v1438_v21  ;;  %v1241_v38 = vadd.f32 %v1240_v22, %v4279_v19  ;;  %v1246_v41 = vrot.slane %v4285_v35, 4  ;;  %4562 = vst [vmem:[#allocation19_spill] sm:$0xff] %v4289_v42 }
 0x165   :  { %3942 = vrsqrt.f32 %v1455_v28  ;;  %v1456_v43 = vadd.f32 1e-05, %v1440_v31  ;;  %v1253_v44 = vadd.f32 %v1252_v32, %v4282_v24  ;;  %v1258_v45 = vrot.slane %v4289_v42, 4  ;;  %v1062_v0 = vpop.f32.mrf.mxu0  ;;  %v1103_v49 = vpop.f32.mrf.mxu1 }
 0x166   :  { %3944 = vrsqrt.f32 %v1454_v37  ;;  %v1242_v47 = vrot.slane %v1241_v38, 2  ;;  %v1247_v48 = vadd.f32 %v1246_v41, %v4285_v35  ;;  %v1497_v11 = vcombine.low %v3937_v5, %v3933_v62 }
 0x167   :  { %3946 = vrsqrt.f32 %v1456_v43  ;;  %v1254_v50 = vrot.slane %v1253_v44, 2  ;;  %v1259_v51 = vadd.f32 %v1258_v45, %v4289_v42  ;;  %v1063_v52 = vpop.f32.mrf.mxu0  ;;  %v1104_v55 = vpop.f32.mrf.mxu1  ;;  %v1498_v21 = vcombine.low %v3939_v8, %v3935_v2  ;;  %v1188_v2 = vld [vmem:[#allocation7] sm:$0xff] }
 0x168   :  { %v1243_v53 = vadd.f32 %v1242_v47, %v1241_v38  ;;  %v1248_v54 = vrot.slane %v1247_v48, 2  ;;  %v4321_v8 = vsub.s32 1, %v1505_v59 }
 0x169   :  { %v1255_v56 = vadd.f32 %v1254_v50, %v1253_v44  ;;  %v1260_v57 = vrot.slane %v1259_v51, 2  ;;  %v1507_v44 = vrot.slane %v1497_v11, %v4295_v15  ;;  %v1514_v45 = vrot.slane %v1498_v21, %v4295_v15 }
 0x16a   :  { %v1244_v60 = vrot.slane %v1243_v53, 1  ;;  %v1249_v61 = vadd.f32 %v1248_v54, %v1247_v48  ;;  %v4325_v11 = vsub.s32 3, %v1505_v59  ;;  %v4327_v21 = vsub.s32 4, %v1505_v59 }
 0x16b   :  { %v1256_v63 = vrot.slane %v1255_v56, 1  ;;  %v1261_v1 = vadd.f32 %v1260_v57, %v1259_v51  ;;  %v1529_v54 = vcombine.low %v1507_v44, %v1514_v45 }
 0x16c   :  { %v1245_v3 = vadd.f32 %v1244_v60, %v1243_v53  ;;  %v1250_v4 = vrot.slane %v1249_v61, 1 }
 0x16d   :  { %v1257_v6 = vadd.f32 %v1256_v63, %v1255_v56  ;;  %v1262_v7 = vrot.slane %v1261_v1, 1  ;;  %v1537_v62 = vrot.slane %v1529_v54, %v4295_v15 }
 0x16e   :  { %v4297_v16 = vmul.f32 0.125, %v1245_v3  ;;  %v1251_v18 = vadd.f32 %v1250_v4, %v1249_v61 }
 0x16f   :  { %v4299_v22 = vmul.f32 0.125, %v1257_v6  ;;  %v1263_v25 = vadd.f32 %v1262_v7, %v1261_v1  ;;  %v4319_v1 = vsub.s32 0, %v1505_v59 }
 0x170   :  { %v1313_v27 = vsub.f32 %v4279_v19, %v4297_v16  ;;  %v4303_v28 = vmul.f32 0.125, %v1251_v18  ;;  %v4323_v18 = vsub.s32 2, %v1505_v59 }
 0x171   :  { %v3941_v31 = vpop.eup %3940  ;;  %v1315_v32 = vsub.f32 %v4282_v24, %v4299_v22  ;;  %v4307_v37 = vmul.f32 0.125, %v1263_v25  ;;  %v4329_v25 = vsub.s32 5, %v1505_v59 }
 0x172   :  { %v3943_v38 = vpop.eup %3942  ;;  %v1314_v41 = vsub.f32 %v4285_v35, %v4303_v28  ;;  %v1329_v48 = vmul.f32 %v1313_v27, %v1313_v27  ;;  %v4331_v27 = vsub.s32 6, %v1505_v59 }
 0x173   :  { %v3945_v43 = vpop.eup %3944  ;;  %v1316_v0 = vsub.f32 %v4289_v42, %v4307_v37  ;;  %v1331_v49 = vmul.f32 %v1315_v32, %v1315_v32 }
 0x174   :  { %v3947_v46 = vpop.eup %3946  ;;  %v1499_v47 = vcombine.low %v3941_v31, %v3945_v43  ;;  %v1330_v50 = vmul.f32 %v1314_v41, %v1314_v41  ;;  %v1385_v56 = vrot.slane %v1329_v48, 4  ;;  %v4333_v31 = vsub.s32 7, %v1505_v59 }
 0x175   :  { %v1500_v51 = vcombine.low %v3943_v38, %v3947_v46  ;;  %v1332_v52 = vmul.f32 %v1316_v0, %v1316_v0  ;;  %v1397_v57 = vrot.slane %v1331_v49, 4 }
 0x176   :  { %v1521_v53 = vrot.slane %v1499_v47, %v4295_v15  ;;  %v1391_v58 = vrot.slane %v1330_v50, 4  ;;  %v1386_v3 = vadd.f32 %v1385_v56, %v1329_v48 }
 0x177   :  { %v1528_v55 = vrot.slane %v1500_v51, %v4295_v15  ;;  %v1403_v60 = vrot.slane %v1332_v52, 4  ;;  %v1398_v4 = vadd.f32 %v1397_v57, %v1331_v49 }
 0x178   :  { %v1392_v5 = vadd.f32 %v1391_v58, %v1330_v50  ;;  %v1387_v38 = vrot.slane %v1386_v3, 2 }
 0x179   :  { %v1530_v61 = vcombine.low %v1521_v53, %v1528_v55  ;;  %v1404_v6 = vadd.f32 %v1403_v60, %v1332_v52  ;;  %v1399_v41 = vrot.slane %v1398_v4, 2 }
 0x17a   :  { %v1393_v43 = vrot.slane %v1392_v5, 2 }
 0x17b   :  { %v1544_v63 = vrot.slane %v1530_v61, %v4295_v15  ;;  %v1405_v44 = vrot.slane %v1404_v6, 2  ;;  %v4384_v35 = vadd.f32 %v1399_v41, %v1398_v4 }
 0x17c   :  { %v1394_v19 = vadd.f32 %v1393_v43, %v1392_v5 }
 0x17d   :  { %v1545_v7 = vcombine.low %v1537_v62, %v1544_v63  ;;  %v1388_v63 = vadd.f32 %v1387_v38, %v1386_v3 }
 0x17f   :  { %v1597_v32 = vmul.f32 %v1545_v7, %v1188_v2  ;;  %v1389_v3 = vrot.slane %v1388_v63, 1 }
 0x181   :  { %v4336_v45 = vrot.slane %v1597_v32, %v4319_v1  ;;  %v4339_v0 = vrot.slane %v1597_v32, %v4321_v8  ;;  %v4342_v46 = vrot.slane %v1597_v32, %v4323_v18  ;;  %v4345_v47 = vrot.slane %v1597_v32, %v4325_v11  ;;  %v4347_v48 = vpop.f32.mrf.mxu0  ;;  %v4359_v52 = vpop.f32.mrf.mxu1 }
 0x182   :  { %v4350_v59 = vrot.slane %v1597_v32, %v4327_v21  ;;  %v4353_v49 = vrot.slane %v1597_v32, %v4329_v25  ;;  %v4356_v50 = vrot.slane %v1597_v32, %v4331_v27  ;;  %v1632_v51 = vrot.slane %v1597_v32, %v4333_v31 }
 0x183   :  { %v1681_v53 = vmul.f32 %v4336_v45, %v4235_v13  ;;  %v1682_v54 = vmul.f32 %v4339_v0, %v4231_v10  ;;  %v1683_v55 = vmul.f32 %v4342_v46, %v4237_v14  ;;  %v1684_v56 = vmul.f32 %v4345_v47, %v4233_v12  ;;  %v4369_v57 = vpop.f32.mrf.mxu0  ;;  %v4378_v10 = vpop.f32.mrf.mxu1 }
 0x184   :  { %v1685_v58 = vmul.f32 %v4350_v59, %v4263_v9  ;;  %v1686_v60 = vmul.f32 %v4353_v49, %v4269_v20  ;;  %v1687_v13 = vmul.f32 %v4356_v50, %v4265_v17  ;;  %v1688_v61 = vmul.f32 %v1632_v51, %v4273_v23 }
 0x185   :  { %v1713_v62 = vcombine.low %v1681_v53, %v1682_v54  ;;  %v1714_v14 = vcombine.low %v1683_v55, %v1684_v56  ;;  %v1144_v2 = vpop.f32.mrf.mxu0  ;;  %v1185_v32 = vpop.f32.mrf.mxu1  ;;  %v1406_v20 = vadd.f32 %v1405_v44, %v1404_v6  ;;  %v1264_v38 = vrot.slane %v4347_v48, 4 }
 0x186   :  { %v1715_v12 = vcombine.low %v1685_v58, %v1686_v60  ;;  %v1716_v7 = vcombine.low %v1687_v13, %v1688_v61  ;;  %v1276_v55 = vrot.slane %v4359_v52, 4  ;;  %v1270_v58 = vrot.slane %v4369_v57, 4  ;;  %v1190_v13 = vld [vmem:[#allocation8] sm:$0xff] }
 0x187   :  { %v1723_v24 = vrot.slane %v1713_v62, %v4295_v15  ;;  %v1730_v9 = vrot.slane %v1714_v14, %v4295_v15  ;;  %v1145_v42 = vpop.f32.mrf.mxu0  ;;  %v1186_v53 = vpop.f32.mrf.mxu1  ;;  %v1282_v5 = vrot.slane %v4378_v10, 4  ;;  %v1395_v6 = vrot.slane %v1394_v19, 1 }
 0x188   :  { %v1737_v17 = vrot.slane %v1715_v12, %v4295_v15  ;;  %v1744_v23 = vrot.slane %v1716_v7, %v4295_v15  ;;  %v1407_v43 = vrot.slane %v1406_v20, 1  ;;  %v1265_v44 = vadd.f32 %v1264_v38, %v4347_v48 }
 0x189   :  { %v1745_v54 = vcombine.low %v1723_v24, %v1730_v9  ;;  %v1277_v24 = vadd.f32 %v1276_v55, %v4359_v52  ;;  %v1271_v41 = vadd.f32 %v1270_v58, %v4369_v57  ;;  %v1283_v60 = vadd.f32 %v1282_v5, %v4378_v10 }
 0x18a   :  { %v1746_v56 = vcombine.low %v1737_v17, %v1744_v23  ;;  %v4396_v61 = vadd.f32 %v1389_v3, %v1388_v63  ;;  %v1401_v62 = vrot.slane %v4384_v35, 1  ;;  %v1266_v14 = vrot.slane %v1265_v44, 2 }
 0x18b   :  { %v1753_v42 = vrot.slane %v1745_v54, %v4295_v15  ;;  %v1278_v12 = vrot.slane %v1277_v24, 2  ;;  %v1272_v7 = vrot.slane %v1271_v41, 2  ;;  %v1284_v32 = vrot.slane %v1283_v60, 2 }
 0x18c   :  { %v1760_v4 = vrot.slane %v1746_v56, %v4295_v15  ;;  %v1822_v9 = vmul.f32 %v1632_v51, %v4257_v40  ;;  %v1396_v17 = vadd.f32 %v1395_v6, %v1394_v19  ;;  %v1408_v23 = vadd.f32 %v1407_v43, %v1406_v20 }
 0x18d   :  { %v1267_v53 = vadd.f32 %v1266_v14, %v1265_v44  ;;  %v1279_v38 = vadd.f32 %v1278_v12, %v1277_v24  ;;  %v1273_v55 = vadd.f32 %v1272_v7, %v1271_v41  ;;  %v1285_v56 = vadd.f32 %v1284_v32, %v1283_v60 }
 0x18e   :  { %v1761_v2 = vcombine.low %v1753_v42, %v1760_v4  ;;  %v1816_v63 = vmul.f32 %v4339_v0, %v4221_v36  ;;  %v1818_v3 = vmul.f32 %v4345_v47, %v4225_v39  ;;  %v1815_v5 = vmul.f32 %v4336_v45, %v4215_v30 }
 0x18f   :  { %v1268_v58 = vrot.slane %v1267_v53, 1  ;;  %v1280_v42 = vrot.slane %v1279_v38, 1  ;;  %v1274_v40 = vrot.slane %v1273_v55, 1  ;;  %v1286_v19 = vrot.slane %v1285_v56, 1 }
 0x190   :  { %v4400_v54 = vsub.f32 %v1190_v13, %v1761_v2  ;;  %v1817_v51 = vmul.f32 %v4342_v46, %v4218_v34  ;;  %v1820_v14 = vmul.f32 %v4353_v49, %v4253_v33 }
 0x191   :  { %v1269_v20 = vadd.f32 %v1268_v58, %v1267_v53  ;;  %v1281_v30 = vadd.f32 %v1280_v42, %v1279_v38  ;;  %v1275_v45 = vadd.f32 %v1274_v40, %v1273_v55  ;;  %v1287_v0 = vadd.f32 %v1286_v19, %v1285_v56 }
 0x192   :  { %v1840_v6 = vrot.slane %v4400_v54, %v4321_v8  ;;  %v1848_v43 = vrot.slane %v4400_v54, %v4325_v11  ;;  %v1836_v36 = vrot.slane %v4400_v54, %v4319_v1  ;;  %v1864_v39 = vrot.slane %v4400_v54, %v4333_v31 }
 0x193   :  { %v4418_v47 = vmul.f32 0.125, %v1269_v20  ;;  %v4420_v4 = vmul.f32 0.125, %v1281_v30  ;;  %v4422_v24 = vmul.f32 0.125, %v1275_v45  ;;  %v4424_v41 = vmul.f32 0.125, %v1287_v0 }
 0x194   :  { %v1914_v44 = vadd.f32 %v1840_v6, %v1816_v63  ;;  %v1916_v34 = vadd.f32 %v1848_v43, %v1818_v3  ;;  %v1913_v46 = vadd.f32 %v1836_v36, %v1815_v5  ;;  %v1844_v60 = vrot.slane %v4400_v54, %v4323_v18 }
 0x195   :  { %v1317_v13 = vsub.f32 %v4347_v48, %v4418_v47  ;;  %v1856_v2 = vrot.slane %v4400_v54, %v4329_v25  ;;  %v1319_v12 = vsub.f32 %v4359_v52, %v4420_v4  ;;  %v1318_v7 = vsub.f32 %v4369_v57, %v4422_v24 }
 0x196   :  { %3948 = vtanh.f32 %v1914_v44  ;;  %v1320_v32 = vsub.f32 %v4378_v10, %v4424_v41  ;;  %v1920_v53 = vadd.f32 %v1864_v39, %v1822_v9  ;;  %v1915_v55 = vadd.f32 %v1844_v60, %v1817_v51 }
 0x197   :  { %3950 = vtanh.f32 %v1916_v34  ;;  %v1333_v38 = vmul.f32 %v1317_v13, %v1317_v13  ;;  %v1335_v56 = vmul.f32 %v1319_v12, %v1319_v12  ;;  %v1334_v58 = vmul.f32 %v1318_v7, %v1318_v7 }
 0x198   :  { %3952 = vtanh.f32 %v1913_v46  ;;  %v1336_v33 = vmul.f32 %v1320_v32, %v1320_v32  ;;  %v1918_v49 = vadd.f32 %v1856_v2, %v1820_v14  ;;  %v1402_v63 = vadd.f32 %v1401_v62, %v4384_v35 }
 0x199   :  { %v1442_v3 = vmul.f32 0.125, %v1396_v17  ;;  %v1409_v5 = vrot.slane %v1333_v38, 4  ;;  %3954 = vtanh.f32 %v1915_v55  ;;  %v1421_v42 = vrot.slane %v1335_v56, 4 }
 0x19a   :  { %v1415_v40 = vrot.slane %v1334_v58, 4  ;;  %v1427_v19 = vrot.slane %v1336_v33, 4  ;;  %3956 = vtanh.f32 %v1918_v49  ;;  %v1444_v20 = vmul.f32 0.125, %v1408_v23 }
 0x19b   :  { %v1410_v6 = vadd.f32 %v1409_v5, %v1333_v38  ;;  %3958 = vtanh.f32 %v1920_v53  ;;  %v1422_v9 = vadd.f32 %v1421_v42, %v1335_v56  ;;  %v1441_v51 = vmul.f32 0.125, %v4396_v61  ;;  %v3840_v42 = vld [vmem:[#allocation10 + $0x170] sm:$0xff]  }
 0x19c   :  { %v1416_v43 = vadd.f32 %v1415_v40, %v1334_v58  ;;  %v1428_v36 = vadd.f32 %v1427_v19, %v1336_v33  ;;  %v1443_v39 = vmul.f32 0.125, %v1402_v63  ;;  %v1458_v45 = vadd.f32 1e-05, %v1442_v3  ;;  %v3838_v63 = vld [vmem:[#allocation10 + $0x138] sm:$0xff]  }
 0x19d   :  { %v1411_v30 = vrot.slane %v1410_v6, 2  ;;  %v1423_v0 = vrot.slane %v1422_v9, 2  ;;  %v1460_v17 = vadd.f32 1e-05, %v1444_v20  ;;  %v1457_v13 = vadd.f32 1e-05, %v1441_v51 }
 0x19e   :  { %v1417_v35 = vrot.slane %v1416_v43, 2  ;;  %v1429_v62 = vrot.slane %v1428_v36, 2  ;;  %v1459_v23 = vadd.f32 1e-05, %v1443_v39  ;;  %3960 = vrsqrt.f32 %v1458_v45  ;;  %v3841_v39 = vld [vmem:[#allocation10 + $0x1f0] sm:$0xff]  }
 0x19f   :  { %v1412_v44 = vadd.f32 %v1411_v30, %v1410_v6  ;;  %v1424_v34 = vadd.f32 %v1423_v0, %v1422_v9  ;;  %3962 = vrsqrt.f32 %v1460_v17  ;;  %v3839_v9 = vld [vmem:[#allocation10 + $0x1b8] sm:$0xff]   ;;  %v3842_v30 = vld [vmem:[#allocation10 + $0x130] sm:$0xff]  }
 0x1a0   :  { %v1418_v46 = vadd.f32 %v1417_v35, %v1416_v43  ;;  %v1430_v60 = vadd.f32 %v1429_v62, %v1428_v36  ;;  %3964 = vrsqrt.f32 %v1457_v13  ;;  %v3846_v13 = vld [vmem:[#allocation10 + $0x128] sm:$0xff]  }
 0x1a1   :  { %v1413_v14 = vrot.slane %v1412_v44, 1  ;;  %v1425_v12 = vrot.slane %v1424_v34, 1  ;;  %3966 = vrsqrt.f32 %v1459_v23  ;;  %v1852_v23 = vrot.slane %v4400_v54, %v4327_v21 }
 0x1a2   :  { %v1419_v7 = vrot.slane %v1418_v46, 1  ;;  %v1431_v32 = vrot.slane %v1430_v60, 1 }
 0x1a3   :  { %v3949_v2 = vpop.eup %3948  ;;  %v1414_v53 = vadd.f32 %v1413_v14, %v1412_v44  ;;  %v1426_v56 = vadd.f32 %v1425_v12, %v1424_v34  ;;  %v3844_v34 = vld [vmem:[#allocation10 + $0x168] sm:$0xff]   ;;  %v3848_v14 = vld [vmem:[#allocation10 + $0x160] sm:$0xff]  }
 0x1a4   :  { %v3951_v61 = vpop.eup %3950  ;;  %v1946_v38 = vpack.c.bf16 %v3949_v2, %v3949_v2  ;;  %v1420_v58 = vadd.f32 %v1419_v7, %v1418_v46  ;;  %v1432_v33 = vadd.f32 %v1431_v32, %v1430_v60  ;;  %v3843_v46 = vld [vmem:[#allocation10 + $0x1b0] sm:$0xff]   ;;  %v3845_v60 = vld [vmem:[#allocation10 + $0x1e8] sm:$0xff]   ;;  %v1860_v2 = vrot.slane %v4400_v54, %v4331_v27  ;;  %v3851_v54 = vld [vmem:[#allocation10 + $0x1a0] sm:$0xff]  }
 0x1a5   :  { %v3953_v55 = vpop.eup %3952  ;;  %v1948_v49 = vpack.c.bf16 %v3951_v61, %v3951_v61  ;;  %v1445_v3 = vmul.f32 0.125, %v1414_v53  ;;  %v1447_v19 = vmul.f32 0.125, %v1426_v56  ;;  %v3847_v12 = vld [vmem:[#allocation10 + $0x1a8] sm:$0xff]   ;;  %v1819_v7 = vmul.f32 %v4350_v59, %v4247_v26  ;;  %v3849_v61 = vld [vmem:[#allocation10 + $0x1e0] sm:$0xff]  }
 0x1a6   :  { %3017 = vmatprep.mubr.bf16.mxu0 %v1946_v38  ;;  %v1945_v5 = vpack.c.bf16 %v3953_v55, %v3953_v55  ;;  %v3955_v40 = vpop.eup %3954  ;;  %v1446_v20 = vmul.f32 0.125, %v1420_v58  ;;  %v1448_v6 = vmul.f32 0.125, %v1432_v33  ;;  %v1821_v53 = vmul.f32 %v4356_v50, %v4250_v29  ;;  %v3850_v55 = vld [vmem:[#allocation10 + $0x120] sm:$0xff]   ;;  %v3852_v58 = vld [vmem:[#allocation10 + $0x158] sm:$0xff]   ;;  %v3856_v29 = vld [vmem:[#allocation10 + $0x150] sm:$0xff]  }
 0x1a7   :  { %3057 = vmatprep.mubr.bf16.mxu1 %v1948_v49  ;;  %v3957_v43 = vpop.eup %3956  ;;  %v1461_v36 = vadd.f32 1e-05, %v1445_v3  ;;  %v1947_v51 = vpack.c.bf16 %v3955_v40, %v3955_v40  ;;  %v1463_v0 = vadd.f32 1e-05, %v1447_v19  ;;  %v1917_v56 = vadd.f32 %v1852_v23, %v1819_v7  ;;  %v3853_v3 = vld [vmem:[#allocation10 + $0x1d8] sm:$0xff]   ;;  %v3857_v19 = vld [vmem:[#allocation10 + $0x1d0] sm:$0xff]  }
 0x1a8   :  { %3018 = vmatmul.mubr.bf16.vlgmr.msra.gmra.mxu0 %v1945_v5  ;;  %v3959_v45 = vpop.eup %3958  ;;  %v1462_v35 = vadd.f32 1e-05, %v1446_v20  ;;  %v1464_v62 = vadd.f32 1e-05, %v1448_v6  ;;  %v1950_v17 = vpack.c.bf16 %v3957_v43, %v3957_v43  ;;  %v1919_v33 = vadd.f32 %v1860_v2, %v1821_v53  ;;  %v3854_v5 = vld [vmem:[#allocation10 + $0x118] sm:$0xff]   ;;  %v3858_v43 = vld [vmem:[#allocation10 + $0x110] sm:$0xff]  }
 0x1a9   :  { %3662 = vmatpush3.bf16.msra.mxu0 %v3838_v63  ;;  %3968 = vrsqrt.f32 %v1461_v36  ;;  %3058 = vmatmul.mubr.bf16.vlgmr.msra.gmra.mxu1 %v1947_v51  ;;  %v1952_v44 = vpack.c.bf16 %v3959_v45, %v3959_v45  ;;  %v3859_v45 = vld [vmem:[#allocation10 + $0x190] sm:$0xff]   ;;  %v3866_v2 = vld [vmem:[#allocation10 + $0x100] sm:$0xff]   ;;  %v1189_v7 = vld [vmem:[#allocation7 + $0x8] sm:$0xff] }
 0x1aa   :  { %3663 = vmatprep.subr.bf16.mxu0 %v3840_v42  ;;  %3970 = vrsqrt.f32 %v1463_v0  ;;  %3684 = vmatpush3.bf16.msra.mxu1 %v3839_v9  ;;  %v3855_v42 = vld [vmem:[#allocation10 + $0x198] sm:$0xff]  }
 0x1ab   :  { %3097 = vmatprep.mubr.bf16.mxu0 %v1950_v17  ;;  %3972 = vrsqrt.f32 %v1462_v35  ;;  %3137 = vmatprep.mubr.bf16.mxu1 %v1952_v44  ;;  %v3961_v32 = vpop.eup %3960  ;;  %v3861_v35 = vld [vmem:[#allocation10 + $0x1c8] sm:$0xff]  }
 0x1ac   :  { %3685 = vmatprep.subr.bf16.mxu1 %v3841_v39  ;;  %3974 = vrsqrt.f32 %v1464_v62  ;;  %v3963_v38 = vpop.eup %3962  ;;  %v3860_v39 = vld [vmem:[#allocation10 + $0x148] sm:$0xff]  }
 0x1ad   :  { %3664 = vmatpush3.bf16.msra.mxu0 %v3842_v30  ;;  %v3965_v49 = vpop.eup %3964  ;;  %3976 = vtanh.f32 %v1917_v56  ;;  %v3862_v44 = vld [vmem:[#allocation10 + $0x108] sm:$0xff]   ;;  %v3869_v56 = vld [vmem:[#allocation10 + $0x2f8] sm:$0xff]  }
 0x1ae   :  { %3665 = vmatprep.subr.bf16.mxu0 %v3844_v34  ;;  %3686 = vmatpush3.bf16.msra.mxu1 %v3843_v46  ;;  %v3967_v63 = vpop.eup %3966  ;;  %v1546_v26 = vcombine.low %v3965_v49, %v3961_v32  ;;  %3978 = vtanh.f32 %v1919_v33  ;;  %v3864_v34 = vld [vmem:[#allocation10 + $0x140] sm:$0xff]   ;;  %v3868_v32 = vld [vmem:[#allocation10 + $0x278] sm:$0xff]  }
 0x1af   :  { %3687 = vmatprep.subr.bf16.mxu1 %v3845_v60  ;;  %v1547_v59 = vcombine.low %v3967_v63, %v3963_v38  ;;  %v3863_v60 = vld [vmem:[#allocation10 + $0x188] sm:$0xff]   ;;  %v3867_v38 = vld [vmem:[#allocation10 + $0x180] sm:$0xff]  }
 0x1b0   :  { %v1556_v6 = vrot.slane %v1546_v26, %v4295_v15  ;;  %v3870_v26 = vld [vmem:[#allocation10 + $0x238] sm:$0xff]  }
 0x1b1   :  { %3666 = vmatpush3.bf16.msra.mxu0 %v3846_v13  ;;  %v1563_v9 = vrot.slane %v1547_v59, %v4295_v15  ;;  %v3865_v13 = vld [vmem:[#allocation10 + $0x1c0] sm:$0xff]   ;;  %v3871_v59 = vld [vmem:[#allocation10 + $0x2b8] sm:$0xff]  }
 0x1b2   :  { %3667 = vmatprep.subr.bf16.mxu0 %v3848_v14  ;;  %3688 = vmatpush3.bf16.msra.mxu1 %v3847_v12 }
 0x1b3   :  { %3689 = vmatprep.subr.bf16.mxu1 %v3849_v61  ;;  %v1578_v62 = vcombine.low %v1556_v6, %v1563_v9 }
 0x1b5   :  { %3668 = vmatpush3.bf16.msra.mxu0 %v3850_v55  ;;  %v1586_v23 = vrot.slane %v1578_v62, %v4295_v15 }
 0x1b6   :  { %3669 = vmatprep.subr.bf16.mxu0 %v3852_v58  ;;  %v3969_v50 = vpop.eup %3968  ;;  %3690 = vmatpush3.bf16.msra.mxu1 %v3851_v54 }
 0x1b7   :  { %v3971_v40 = vpop.eup %3970  ;;  %3691 = vmatprep.subr.bf16.mxu1 %v3853_v3 }
 0x1b8   :  { %v3973_v20 = vpop.eup %3972 }
 0x1b9   :  { %3670 = vmatpush3.bf16.msra.mxu0 %v3854_v5  ;;  %v3975_v36 = vpop.eup %3974  ;;  %v1548_v51 = vcombine.low %v3969_v50, %v3973_v20 }
 0x1ba   :  { %3671 = vmatprep.subr.bf16.mxu0 %v3856_v29  ;;  %v1549_v30 = vcombine.low %v3971_v40, %v3975_v36  ;;  %3692 = vmatpush3.bf16.msra.mxu1 %v3855_v42  ;;  %v3977_v12 = vpop.eup %3976  ;;  %v3872_v40 = vld [vmem:[#allocation10 + $0x270] sm:$0xff]  }
 0x1bb   :  { %v1570_v0 = vrot.slane %v1548_v51, %v4295_v15  ;;  %3693 = vmatprep.subr.bf16.mxu1 %v3857_v19  ;;  %v3979_v61 = vpop.eup %3978  ;;  %v1949_v58 = vpack.c.bf16 %v3977_v12, %v3977_v12  ;;  %v3873_v19 = vld [vmem:[#allocation10 + $0x2f0] sm:$0xff]   ;;  %v3882_v12 = vld [vmem:[#allocation10 + $0x220] sm:$0xff]  }
 0x1bc   :  { %v1577_v17 = vrot.slane %v1549_v30, %v4295_v15  ;;  %v1951_v33 = vpack.c.bf16 %v3979_v61, %v3979_v61  ;;  %v3884_v61 = vld [vmem:[#allocation10 + $0x258] sm:$0xff]  }
 0x1bd   :  { %3672 = vmatpush3.bf16.msra.mxu0 %v3858_v43 }
 0x1be   :  { %3673 = vmatprep.subr.bf16.mxu0 %v3860_v39  ;;  %v1579_v46 = vcombine.low %v1570_v0, %v1577_v17  ;;  %3694 = vmatpush3.bf16.msra.mxu1 %v3859_v45 }
 0x1bf   :  { %3695 = vmatprep.subr.bf16.mxu1 %v3861_v35  ;;  %v3877_v35 = vld [vmem:[#allocation10 + $0x2e8] sm:$0xff]  }
 0x1c0   :  { %v1593_v14 = vrot.slane %v1579_v46, %v4295_v15 }
 0x1c1   :  { %3674 = vmatpush3.bf16.msra.mxu0 %v3862_v44  ;;  %v3878_v44 = vld [vmem:[#allocation10 + $0x228] sm:$0xff]  }
 0x1c2   :  { %3675 = vmatprep.subr.bf16.mxu0 %v3864_v34  ;;  %v1594_v53 = vcombine.low %v1586_v23, %v1593_v14  ;;  %3696 = vmatpush3.bf16.msra.mxu1 %v3863_v60  ;;  %v3879_v34 = vld [vmem:[#allocation10 + $0x2a8] sm:$0xff]   ;;  %v3880_v60 = vld [vmem:[#allocation10 + $0x260] sm:$0xff]  }
 0x1c3   :  { %3697 = vmatprep.subr.bf16.mxu1 %v3865_v13  ;;  %v3881_v13 = vld [vmem:[#allocation10 + $0x2e0] sm:$0xff]  }
 0x1c4   :  { %v1598_v55 = vmul.f32 %v1594_v53, %v1189_v7  ;;  %v3883_v7 = vld [vmem:[#allocation10 + $0x2a0] sm:$0xff]   ;;  %v3885_v53 = vld [vmem:[#allocation10 + $0x2d8] sm:$0xff]  }
 0x1c5   :  { %3676 = vmatpush3.bf16.msra.mxu0 %v3866_v2  ;;  %v1191_v2 = vld [vmem:[#allocation8 + $0x8] sm:$0xff] }
 0x1c6   :  { %3705 = vmatprep.subr.bf16.mxu0 %v3868_v32  ;;  %v4457_v49 = vrot.slane %v1598_v55, %v4319_v1  ;;  %v4460_v54 = vrot.slane %v1598_v55, %v4321_v8  ;;  %v4463_v63 = vrot.slane %v1598_v55, %v4323_v18  ;;  %v4466_v3 = vrot.slane %v1598_v55, %v4325_v11 }
 0x1c7   :  { %3698 = vmatpush3.bf16.msra.mxu1 %v3867_v38  ;;  %v4469_v5 = vrot.slane %v1598_v55, %v4327_v21  ;;  %v4472_v29 = vrot.slane %v1598_v55, %v4329_v25  ;;  %v4475_v50 = vrot.slane %v1598_v55, %v4331_v27  ;;  %v4478_v42 = vrot.slane %v1598_v55, %v4333_v31  ;;  %v3886_v55 = vld [vmem:[#allocation10 + $0x218] sm:$0xff]  }
 0x1c8   :  { %3098 = vmatmul.mubr.bf16.vlgmr.msra.gmra.mxu0 %v1949_v58  ;;  %v1689_v20 = vmul.f32 %v4457_v49, %v4297_v16  ;;  %v1690_v6 = vmul.f32 %v4460_v54, %v4303_v28  ;;  %v1691_v9 = vmul.f32 %v4463_v63, %v4299_v22  ;;  %v1692_v43 = vmul.f32 %v4466_v3, %v4307_v37  ;;  %v3874_v22 = vld [vmem:[#allocation10 + $0x230] sm:$0xff]   ;;  %v4563_v58 = vld [vmem:[#allocation18_spill] sm:$0xff] }
 0x1c9   :  { %3727 = vmatprep.subr.bf16.mxu1 %v3869_v56  ;;  %v1693_v36 = vmul.f32 %v4469_v5, %v4418_v47  ;;  %v1694_v51 = vmul.f32 %v4472_v29, %v4422_v24  ;;  %v1695_v39 = vmul.f32 %v4475_v50, %v4420_v4  ;;  %v1696_v16 = vmul.f32 %v4478_v42, %v4424_v41  ;;  %v3875_v37 = vld [vmem:[#allocation10 + $0x2b0] sm:$0xff]   ;;  %v3876_v47 = vld [vmem:[#allocation10 + $0x268] sm:$0xff]   ;;  %v3887_v56 = vld [vmem:[#allocation10 + $0x298] sm:$0xff]  }
 0x1ca   :  { %3138 = vmatmul.mubr.bf16.vlgmr.msra.gmra.mxu1 %v1951_v33  ;;  %v1762_v28 = vcombine.low %v1689_v20, %v1690_v6  ;;  %v1763_v30 = vcombine.low %v1691_v9, %v1692_v43  ;;  %3706 = vmatpush3.bf16.msra.mxu0 %v3870_v26  ;;  %v1824_v33 = vmul.f32 %v4460_v54, %v4563_v58  ;;  %v3889_v20 = vld [vmem:[#allocation10 + $0x2d0] sm:$0xff]   ;;  %v3910_v58 = vld [vmem:[#allocation10 + $0x328] sm:$0xff]  }
 0x1cb   :  { %3728 = vmatpush3.bf16.msra.mxu1 %v3871_v59  ;;  %v1764_v45 = vcombine.low %v1693_v36, %v1694_v51  ;;  %v1765_v0 = vcombine.low %v1695_v39, %v1696_v16  ;;  %3707 = vmatprep.subr.bf16.mxu0 %v3872_v40  ;;  %v4565_v59 = vld [vmem:[#allocation16_spill] sm:$0xff]  ;;  %v4566_v43 = vld [vmem:[#allocation17_spill] sm:$0xff] }
 0x1cc   :  { %3729 = vmatprep.subr.bf16.mxu1 %v3873_v19  ;;  %v1772_v24 = vrot.slane %v1762_v28, %v4295_v15  ;;  %v1779_v4 = vrot.slane %v1763_v30, %v4295_v15  ;;  %v1823_v40 = vmul.f32 %v4457_v49, %v4565_v59  ;;  %v3888_v19 = vld [vmem:[#allocation10 + $0x250] sm:$0xff]   ;;  %v1825_v36 = vmul.f32 %v4463_v63, %v4566_v43  ;;  %v3913_v59 = vld [vmem:[#allocation10 + $0x3e0] sm:$0xff]   ;;  %v3916_v43 = vld [vmem:[#allocation10 + $0x358] sm:$0xff]  }
 0x1cd   :  { %v1786_v62 = vrot.slane %v1764_v45, %v4295_v15  ;;  %v1793_v41 = vrot.slane %v1765_v0, %v4295_v15  ;;  %v1830_v63 = vmul.f32 %v4478_v42, %v4378_v10  ;;  %v3891_v16 = vld [vmem:[#allocation10 + $0x290] sm:$0xff]   ;;  %v3896_v10 = vld [vmem:[#allocation10 + $0x240] sm:$0xff]  }
 0x1ce   :  { %v1794_v17 = vcombine.low %v1772_v24, %v1779_v4  ;;  %3708 = vmatpush3.bf16.msra.mxu0 %v3874_v22  ;;  %v3893_v22 = vld [vmem:[#allocation10 + $0x2c8] sm:$0xff]   ;;  %v3897_v42 = vld [vmem:[#allocation10 + $0x2c0] sm:$0xff]  }
 0x1cf   :  { %3730 = vmatpush3.bf16.msra.mxu1 %v3875_v37  ;;  %v1795_v46 = vcombine.low %v1786_v62, %v1793_v41  ;;  %3709 = vmatprep.subr.bf16.mxu0 %v3876_v47  ;;  %v3898_v45 = vld [vmem:[#allocation10 + $0x200] sm:$0xff]   ;;  %v3900_v47 = vld [vmem:[#allocation10 + $0x378] sm:$0xff]  }
 0x1d0   :  { %3731 = vmatprep.subr.bf16.mxu1 %v3877_v35  ;;  %v1802_v23 = vrot.slane %v1794_v17, %v4295_v15  ;;  %v3899_v0 = vld [vmem:[#allocation10 + $0x280] sm:$0xff]   ;;  %v3901_v35 = vld [vmem:[#allocation10 + $0x3f8] sm:$0xff]  }
 0x1d1   :  { %v1809_v14 = vrot.slane %v1795_v46, %v4295_v15  ;;  %v4564_v15 = vld [vmem:[#allocation19_spill] sm:$0xff] }
 0x1d2   :  { %3710 = vmatpush3.bf16.msra.mxu0 %v3878_v44  ;;  %v1826_v26 = vmul.f32 %v4466_v3, %v4564_v15  ;;  %v3902_v44 = vld [vmem:[#allocation10 + $0x338] sm:$0xff]   ;;  %v3912_v15 = vld [vmem:[#allocation10 + $0x360] sm:$0xff]  }
 0x1d3   :  { %3732 = vmatpush3.bf16.msra.mxu1 %v3879_v34  ;;  %v1810_v32 = vcombine.low %v1802_v23, %v1809_v14  ;;  %3711 = vmatprep.subr.bf16.mxu0 %v3880_v60  ;;  %v3903_v60 = vld [vmem:[#allocation10 + $0x3b8] sm:$0xff]   ;;  %v3904_v14 = vld [vmem:[#allocation10 + $0x370] sm:$0xff]  }
 0x1d4   :  { %3733 = vmatprep.subr.bf16.mxu1 %v3881_v13 }
 0x1d5   :  { %v4502_v38 = vsub.f32 %v1191_v2, %v1810_v32 }
 0x1d6   :  { %3712 = vmatpush3.bf16.msra.mxu0 %v3882_v12 }
 0x1d7   :  { %3734 = vmatpush3.bf16.msra.mxu1 %v3883_v7  ;;  %3713 = vmatprep.subr.bf16.mxu0 %v3884_v61  ;;  %v1872_v6 = vrot.slane %v4502_v38, %v4321_v8  ;;  %v1880_v9 = vrot.slane %v4502_v38, %v4325_v11  ;;  %v1896_v54 = vrot.slane %v4502_v38, %v4333_v31  ;;  %v3890_v31 = vld [vmem:[#allocation10 + $0x210] sm:$0xff]  }
 0x1d8   :  { %3735 = vmatprep.subr.bf16.mxu1 %v3885_v53  ;;  %v1868_v3 = vrot.slane %v4502_v38, %v4319_v1  ;;  %v1876_v49 = vrot.slane %v4502_v38, %v4323_v18  ;;  %v1888_v51 = vrot.slane %v4502_v38, %v4329_v25  ;;  %v1828_v11 = vmul.f32 %v4472_v29, %v4369_v57  ;;  %v3892_v18 = vld [vmem:[#allocation10 + $0x248] sm:$0xff]   ;;  %v3905_v7 = vld [vmem:[#allocation10 + $0x3f0] sm:$0xff]  }
 0x1d9   :  { %v1922_v39 = vadd.f32 %v1872_v6, %v1824_v33  ;;  %v1924_v8 = vadd.f32 %v1880_v9, %v1826_v26  ;;  %v1928_v37 = vadd.f32 %v1896_v54, %v1830_v63  ;;  %v3894_v57 = vld [vmem:[#allocation10 + $0x208] sm:$0xff]   ;;  %v3906_v61 = vld [vmem:[#allocation10 + $0x330] sm:$0xff]   ;;  %v1884_v26 = vrot.slane %v4502_v38, %v4327_v21  ;;  %v3915_v9 = vld [vmem:[#allocation10 + $0x3a0] sm:$0xff]  }
 0x1da   :  { %3714 = vmatpush3.bf16.msra.mxu0 %v3886_v55  ;;  %v1921_v28 = vadd.f32 %v1868_v3, %v1823_v40  ;;  %v1923_v30 = vadd.f32 %v1876_v49, %v1825_v36  ;;  %v1926_v25 = vadd.f32 %v1888_v51, %v1828_v11  ;;  %v3895_v29 = vld [vmem:[#allocation10 + $0x288] sm:$0xff]   ;;  %v3907_v53 = vld [vmem:[#allocation10 + $0x3b0] sm:$0xff]   ;;  %v1892_v40 = vrot.slane %v4502_v38, %v4331_v27  ;;  %v3917_v21 = vld [vmem:[#allocation10 + $0x3d8] sm:$0xff]  }
 0x1db   :  { %3736 = vmatpush3.bf16.msra.mxu1 %v3887_v56  ;;  %3715 = vmatprep.subr.bf16.mxu0 %v3888_v19  ;;  %3980 = vtanh.f32 %v1922_v39  ;;  %v3908_v55 = vld [vmem:[#allocation10 + $0x368] sm:$0xff]   ;;  %v1827_v19 = vmul.f32 %v4469_v5, %v4347_v48  ;;  %v1829_v6 = vmul.f32 %v4475_v50, %v4359_v52  ;;  %v3918_v3 = vld [vmem:[#allocation10 + $0x318] sm:$0xff]   ;;  %v3920_v38 = vld [vmem:[#allocation10 + $0x350] sm:$0xff]  }
 0x1dc   :  { %3737 = vmatprep.subr.bf16.mxu1 %v3889_v20  ;;  %3982 = vtanh.f32 %v1924_v8  ;;  %v3909_v56 = vld [vmem:[#allocation10 + $0x3e8] sm:$0xff]   ;;  %v3914_v20 = vld [vmem:[#allocation10 + $0x320] sm:$0xff]   ;;  %v3919_v27 = vld [vmem:[#allocation10 + $0x398] sm:$0xff]  }
 0x1dd   :  { %3984 = vtanh.f32 %v1921_v28  ;;  %v3911_v33 = vld [vmem:[#allocation10 + $0x3a8] sm:$0xff]   ;;  %v1925_v36 = vadd.f32 %v1884_v26, %v1827_v19  ;;  %v1927_v54 = vadd.f32 %v1892_v40, %v1829_v6  ;;  %v3921_v48 = vld [vmem:[#allocation10 + $0x3d0] sm:$0xff]   ;;  %v3928_v8 = vld [vmem:[#allocation10 + $0x340] sm:$0xff]  }
 0x1de   :  { %3716 = vmatpush3.bf16.msra.mxu0 %v3890_v31  ;;  %3986 = vtanh.f32 %v1923_v30  ;;  %v3922_v52 = vld [vmem:[#allocation10 + $0x310] sm:$0xff]   ;;  %v3924_v50 = vld [vmem:[#allocation10 + $0x348] sm:$0xff]   ;;  %v3929_v11 = vld [vmem:[#allocation10 + $0x3c0] sm:$0xff]  }
 0x1df   :  { %3738 = vmatpush3.bf16.msra.mxu1 %v3891_v16  ;;  %3717 = vmatprep.subr.bf16.mxu0 %v3892_v18  ;;  %3988 = vtanh.f32 %v1926_v25  ;;  %v3923_v5 = vld [vmem:[#allocation10 + $0x390] sm:$0xff]   ;;  %v3925_v49 = vld [vmem:[#allocation10 + $0x3c8] sm:$0xff]   ;;  %v3930_v63 = vld [vmem:[#allocation10 + $0x300] sm:$0xff]  }
 0x1e0   :  { %3739 = vmatprep.subr.bf16.mxu1 %v3893_v22  ;;  %3990 = vtanh.f32 %v1928_v37  ;;  %v3926_v51 = vld [vmem:[#allocation10 + $0x308] sm:$0xff]   ;;  %v3931_v31 = vld [vmem:[#allocation10 + $0x380] sm:$0xff]  }
 0x1e1   :  { %3992 = vtanh.f32 %v1925_v36  ;;  %v3927_v39 = vld [vmem:[#allocation10 + $0x388] sm:$0xff]  }
 0x1e2   :  { %3718 = vmatpush3.bf16.msra.mxu0 %v3894_v57  ;;  %3994 = vtanh.f32 %v1927_v54 }
 0x1e3   :  { %3740 = vmatpush3.bf16.msra.mxu1 %v3895_v29  ;;  %3719 = vmatprep.subr.bf16.mxu0 %v3896_v10 }
 0x1e4   :  { %3741 = vmatprep.subr.bf16.mxu1 %v3897_v42 }
 0x1e6   :  { %3720 = vmatpush3.bf16.msra.mxu0 %v3898_v45 }
 0x1e7   :  { %3742 = vmatpush3.bf16.msra.mxu1 %v3899_v0  ;;  %3749 = vmatprep.subr.bf16.mxu0 %v3900_v47 }
 0x1e8   :  { %3771 = vmatprep.subr.bf16.mxu1 %v3901_v35  ;;  %v3981_v24 = vpop.eup %3980 }
 0x1e9   :  { %v3983_v4 = vpop.eup %3982  ;;  %v1954_v62 = vpack.c.bf16 %v3981_v24, %v3981_v24 }
 0x1ea   :  { %v3985_v41 = vpop.eup %3984  ;;  %v1956_v17 = vpack.c.bf16 %v3983_v4, %v3983_v4 }
 0x1eb   :  { %v3987_v34 = vpop.eup %3986  ;;  %3177 = vmatprep.mubr.bf16.mxu0 %v1954_v62  ;;  %v1953_v46 = vpack.c.bf16 %v3985_v41, %v3985_v41 }
 0x1ec   :  { %v3989_v13 = vpop.eup %3988  ;;  %3217 = vmatprep.mubr.bf16.mxu1 %v1956_v17  ;;  %v1955_v23 = vpack.c.bf16 %v3987_v34, %v3987_v34 }
 0x1ed   :  { %v3991_v2 = vpop.eup %3990  ;;  %3178 = vmatmul.mubr.bf16.vlgmr.msra.gmra.mxu0 %v1953_v46  ;;  %v1958_v12 = vpack.c.bf16 %v3989_v13, %v3989_v13 }
 0x1ee   :  { %3218 = vmatmul.mubr.bf16.vlgmr.msra.gmra.mxu1 %v1955_v23  ;;  %3750 = vmatpush3.bf16.msra.mxu0 %v3902_v44  ;;  %v1960_v32 = vpack.c.bf16 %v3991_v2, %v3991_v2  ;;  %v3993_v16 = vpop.eup %3992 }
 0x1ef   :  { %3772 = vmatpush3.bf16.msra.mxu1 %v3903_v60  ;;  %3257 = vmatprep.mubr.bf16.mxu0 %v1958_v12  ;;  %v3995_v28 = vpop.eup %3994  ;;  %v1957_v30 = vpack.c.bf16 %v3993_v16, %v3993_v16 }
 0x1f0   :  { %3297 = vmatprep.mubr.bf16.mxu1 %v1960_v32  ;;  %3751 = vmatprep.subr.bf16.mxu0 %v3904_v14  ;;  %v1959_v18 = vpack.c.bf16 %v3995_v28, %v3995_v28 }
 0x1f1   :  { %3773 = vmatprep.subr.bf16.mxu1 %v3905_v7 }
 0x1f2   :  { %3752 = vmatpush3.bf16.msra.mxu0 %v3906_v61 }
 0x1f3   :  { %3774 = vmatpush3.bf16.msra.mxu1 %v3907_v53  ;;  %3753 = vmatprep.subr.bf16.mxu0 %v3908_v55 }
 0x1f4   :  { %3775 = vmatprep.subr.bf16.mxu1 %v3909_v56 }
 0x1f6   :  { %3754 = vmatpush3.bf16.msra.mxu0 %v3910_v58 }
 0x1f7   :  { %3776 = vmatpush3.bf16.msra.mxu1 %v3911_v33  ;;  %3755 = vmatprep.subr.bf16.mxu0 %v3912_v15 }
 0x1f8   :  { %3777 = vmatprep.subr.bf16.mxu1 %v3913_v59 }
 0x1fa   :  { %3756 = vmatpush3.bf16.msra.mxu0 %v3914_v20 }
 0x1fb   :  { %3778 = vmatpush3.bf16.msra.mxu1 %v3915_v9  ;;  %3757 = vmatprep.subr.bf16.mxu0 %v3916_v43 }
 0x1fc   :  { %3779 = vmatprep.subr.bf16.mxu1 %v3917_v21 }
 0x1fe   :  { %3758 = vmatpush3.bf16.msra.mxu0 %v3918_v3 }
 0x1ff   :  { %3780 = vmatpush3.bf16.msra.mxu1 %v3919_v27  ;;  %3759 = vmatprep.subr.bf16.mxu0 %v3920_v38 }
 0x200   :  { %3781 = vmatprep.subr.bf16.mxu1 %v3921_v48 }
 0x202   :  { %3760 = vmatpush3.bf16.msra.mxu0 %v3922_v52 }
 0x203   :  { %3782 = vmatpush3.bf16.msra.mxu1 %v3923_v5  ;;  %3761 = vmatprep.subr.bf16.mxu0 %v3924_v50 }
 0x204   :  { %3783 = vmatprep.subr.bf16.mxu1 %v3925_v49 }
 0x206   :  { %3762 = vmatpush3.bf16.msra.mxu0 %v3926_v51 }
 0x207   :  { %3784 = vmatpush3.bf16.msra.mxu1 %v3927_v39  ;;  %3763 = vmatprep.subr.bf16.mxu0 %v3928_v8 }
 0x208   :  { %3785 = vmatprep.subr.bf16.mxu1 %v3929_v11 }
 0x20a   :  { %3764 = vmatpush3.bf16.msra.mxu0 %v3930_v63 }
 0x20b   :  { %3786 = vmatpush3.bf16.msra.mxu1 %v3931_v31 }
 0x20d   :  { %3258 = vmatmul.mubr.bf16.vlgmr.msra.gmra.mxu0 %v1957_v30 }
 0x20e   :  { %3298 = vmatmul.mubr.bf16.vlgmr.msra.gmra.mxu1 %v1959_v18 }
 0x268   :  { %v3633_v22 = vpop.f32.mrf.mxu0 }
 0x269   :  { %v3655_v25 = vpop.f32.mrf.mxu1 }
 0x26a   :  { %v3634_v37 = vpop.f32.mrf.mxu0 }
 0x26b   :  { %v3635_v57 = vadd.f32 %v3634_v37, %v3633_v22  ;;  %v3656_v29 = vpop.f32.mrf.mxu1 }
 0x26c   :  { %v3636_v10 = vpop.f32.mrf.mxu0  ;;  %v3657_v42 = vadd.f32 %v3656_v29, %v3655_v25  ;;  %v3305_v25 = vld [vmem:[%s4552_s5] sm:$0x1]  ;;  %s4100_s5 = scalar_lea.vmem %s3351_s29, 128 }
 0x26d   :  { %v3658_v45 = vpop.f32.mrf.mxu1  ;;  %v3306_v29 = vld [vmem:[%s4553_s6] sm:$0x1]  ;;  %p4101_p11 = scmp.ne.s32.totalorder %s3351_s29, %s4100_s5  ;;  %p4106_p13 = scmp.lt.s32.totalorder %s4100_s5, %s4100_s5 }
 0x26e   :  { %v3637_v0 = vpop.f32.mrf.mxu0  ;;  %v3060_v47 = vadd.f32 %v3657_v42, %v3635_v57 }
 0x26f   :  { %v3659_v35 = vpop.f32.mrf.mxu1  ;;  %p4107_p0 = por %p4106_p13, %p4105_p12 }
 0x271   :  { %p4108_p1 = pnand %p4107_p0, %p4101_p11 }
 0x288   :  { %v3677_v24 = vpop.f32.mrf.mxu0 }
 0x28a   :  { %v3699_v4 = vpop.f32.mrf.mxu1  ;;  %v3678_v62 = vpop.f32.mrf.mxu0 }
 0x28b   :  { %v3679_v41 = vadd.f32 %v3678_v62, %v3677_v24 }
 0x28c   :  { %v3700_v17 = vpop.f32.mrf.mxu1  ;;  %v3680_v44 = vpop.f32.mrf.mxu0 }
 0x28d   :  { %v3100_v34 = vadd.f32 %v3679_v41, %v3060_v47  ;;  %v3701_v46 = vadd.f32 %v3700_v17, %v3699_v4 }
 0x28e   :  { %v3702_v60 = vpop.f32.mrf.mxu1  ;;  %v3681_v13 = vpop.f32.mrf.mxu0 }
 0x28f   :  { %v3140_v23 = vadd.f32 %v3701_v46, %v3100_v34 }
 0x290   :  { %v3703_v14 = vpop.f32.mrf.mxu1 }
 0x2ad   :  { %v3721_v2 = vpop.f32.mrf.mxu0 }
 0x2ae   :  { %v3743_v12 = vpop.f32.mrf.mxu1 }
 0x2af   :  { %v3722_v7 = vpop.f32.mrf.mxu0 }
 0x2b0   :  { %v3744_v32 = vpop.f32.mrf.mxu1  ;;  %v3723_v58 = vadd.f32 %v3722_v7, %v3721_v2 }
 0x2b1   :  { %v3724_v61 = vpop.f32.mrf.mxu0  ;;  %v3745_v26 = vadd.f32 %v3744_v32, %v3743_v12 }
 0x2b2   :  { %v3746_v53 = vpop.f32.mrf.mxu1  ;;  %v3180_v33 = vadd.f32 %v3723_v58, %v3140_v23 }
 0x2b3   :  { %v3725_v55 = vpop.f32.mrf.mxu0 }
 0x2b4   :  { %v3747_v56 = vpop.f32.mrf.mxu1  ;;  %v3220_v19 = vadd.f32 %v3745_v26, %v3180_v33 }
 0x2cd   :  { %v3765_v15 = vpop.f32.mrf.mxu0 }
 0x2ce   :  { %v3787_v59 = vpop.f32.mrf.mxu1 }
 0x2cf   :  { %v3766_v40 = vpop.f32.mrf.mxu0 }
 0x2d0   :  { %v3767_v20 = vadd.f32 %v3766_v40, %v3765_v15  ;;  %v3788_v6 = vpop.f32.mrf.mxu1 }
 0x2d1   :  { %v3768_v9 = vpop.f32.mrf.mxu0  ;;  %v3789_v36 = vadd.f32 %v3788_v6, %v3787_v59 }
 0x2d2   :  { %v3260_v43 = vadd.f32 %v3767_v20, %v3220_v19  ;;  %v3790_v21 = vpop.f32.mrf.mxu1 }
 0x2d3   :  { %v3769_v54 = vpop.f32.mrf.mxu0 }
 0x2d4   :  { %v3300_v3 = vadd.f32 %v3789_v36, %v3260_v43  ;;  %v3791_v27 = vpop.f32.mrf.mxu1 }
 0x2d6   :  { %v3307_v38 = vrot.slane %v3300_v3, 4 }
 0x2d8   :  { %v3308_v48 = vadd.f32 %v3307_v38, %v3300_v3 }
 0x2da   :  { %v3309_v52 = vrot.slane %v3308_v48, 2 }
 0x2dc   :  { %v3310_v5 = vadd.f32 %v3309_v52, %v3308_v48 }
 0x2de   :  { %v3311_v50 = vrot.slane %v3310_v5, 1 }
 0x2e0   :  { %v3312_v49 = vadd.f32 %v3311_v50, %v3310_v5 }
 0x2e2   :  { %v3313_v51 = vmul.f32 0.125, %v3312_v49 }
 0x2e4   :  { %v3314_v39 = vsub.f32 %v3300_v3, %v3313_v51 }
 0x2e6   :  { %v3315_v8 = vmul.f32 %v3314_v39, %v3314_v39 }
 0x2e8   :  { %v3316_v11 = vrot.slane %v3315_v8, 4 }
 0x2ea   :  { %v3317_v63 = vadd.f32 %v3316_v11, %v3315_v8 }
 0x2ec   :  { %v3318_v31 = vrot.slane %v3317_v63, 2 }
 0x2ee   :  { %v3319_v16 = vadd.f32 %v3318_v31, %v3317_v63 }
 0x2f0   :  { %v3320_v28 = vrot.slane %v3319_v16, 1 }
 0x2f2   :  { %v3321_v30 = vadd.f32 %v3320_v28, %v3319_v16 }
 0x2f4   :  { %v3322_v18 = vmul.f32 0.125, %v3321_v30 }
 0x2f6   :  { %v3323_v22 = vadd.f32 1e-05, %v3322_v18 }
 0x2f8   :  { %3996 = vrsqrt.f32 %v3323_v22 }
 0x305   :  { %v3997_v37 = vpop.eup %3996 }
 0x306   :  { %v3325_v57 = vmul.f32 %v3997_v37, %v3305_v25 }
 0x308   :  { %v3326_v10 = vmul.f32 %v3325_v57, %v3313_v51  ;;  %v3332_v42 = vrot.slane %v3325_v57, %v4319_v1 }
 0x30a   :  { %v3327_v45 = vsub.f32 %v3306_v29, %v3326_v10  ;;  %v3334_v0 = vmul.f32 %v3332_v42, %v3300_v3 }
 0x30c   :  { %v3339_v47 = vrot.slane %v3327_v45, %v4319_v1 }
 0x30e   :  { %v3341_v35 = vadd.f32 %v3339_v47, %v3334_v0 }
 0x310   :  { %3998 = vtanh.f32 %v3341_v35 }
 0x31d   :  { %v3999_v24 = vpop.eup %3998 }
 0x31e   :  { %3343 = vst [vmem:[#allocation11] sm:$0xff] %v3999_v24 }
 0x31f   :  { %4111 = shalt.err (!%p4108_p1)
}
 0x320   :  { %3353 = dma.vmem_to_hbm [thread:$0]  %s3351_s29, 128, %s4554_s7, [#allocation4]  }
 0x321   :  { %4126 = dma.done.wait [#allocation4], 128  }
 0x322   :  { %4127 = vsyncadd [#allocation4], 4294967168 }
 0x323   :  { %3357 = vsyncpa [#allocation3], 1 }
 0x324   :  { %3358 = vsyncpa [#allocation6], 1 }
 0x325   :  { %3359 = vsyncpa [#allocation9], 1 }
 0x326   :  { %3360 = vsyncpa [#allocation4], 1 }

</bundles_post_ra>
